<compile_context>
chip_gen: v7x
topology: tpu7x:2x2x1
jax: 0.10.0
libtpu: 0.0.40
codegen_flags: <defaults>
</compile_context>

<pallas_src>
import math

import jax
import jax.numpy as jnp
from jax.experimental import pallas as pl
from jax.experimental.pallas import tpu as pltpu


# ----------------------------------------------------------------------------
# Pallas GRU recurrence kernel (serial part only: h @ W_hh^T + gates)
# ----------------------------------------------------------------------------
def _gru_kernel(gx_ref, whh_ref, bhn_ref, out_ref, h_scratch):
    """gx_ref: (TC, Bp, 3H) f32 precomputed input projection (biases folded).
    whh_ref: (H, 3H) bf16 = W_hh^T.  bhn_ref: (1, H) f32 = b_hh[n-gate].
    out_ref: (TC, Bp, H) f32.  h_scratch: (Bp, H) f32 carried across chunks."""
    c = pl.program_id(0)

    @pl.when(c == 0)
    def _():
        h_scratch[...] = jnp.zeros_like(h_scratch)

    TC, Bp, G = gx_ref.shape
    H = G // 3

    whh = whh_ref[...]          # (H, 3H) bf16, resident in VMEM
    bhn = bhn_ref[...]          # (1, H) f32
    h = h_scratch[...]          # (Bp, H) f32

    # Statically unrolled time loop over this chunk (TC is small).
    for t in range(TC):
        gx = gx_ref[t]                                   # (Bp, 3H) f32
        gh = jnp.dot(h.astype(jnp.bfloat16), whh,
                     preferred_element_type=jnp.float32)  # (Bp, 3H) f32
        # PyTorch GRU gate order along 3H: [r | z | n]
        r = jax.nn.sigmoid(gx[:, 0:H] + gh[:, 0:H])
        z = jax.nn.sigmoid(gx[:, H:2 * H] + gh[:, H:2 * H])
        n = jnp.tanh(gx[:, 2 * H:] + r * (gh[:, 2 * H:] + bhn))
        h = (1.0 - z) * n + z * h
        out_ref[t] = h.astype(out_ref.dtype)

    h_scratch[...] = h


def _pick_chunk(T, max_chunk=32):
    tc = min(T, max_chunk)
    while T % tc != 0:
        tc -= 1
    return tc


def _gru_recurrence(gx, whh_t_bf16, bhn, *, max_chunk=32):
    """gx: (T, Bp, 3H) f32, whh_t_bf16: (H, 3H) bf16, bhn: (1, H) f32.
    Returns out: (T, Bp, H) f32 where out[t] = h_{t+1}."""
    T, Bp, G = gx.shape
    H = G // 3
    TC = _pick_chunk(T, max_chunk)

    grid_spec = pltpu.PrefetchScalarGridSpec(
        num_scalar_prefetch=0,
        grid=(T // TC,),
        in_specs=[
            pl.BlockSpec((TC, Bp, G), lambda c: (c, 0, 0)),   # gx chunk
            pl.BlockSpec((H, G), lambda c: (0, 0)),           # W_hh^T (resident)
            pl.BlockSpec((1, H), lambda c: (0, 0)),           # b_hh[n]
        ],
        out_specs=pl.BlockSpec((TC, Bp, H), lambda c: (c, 0, 0)),
        scratch_shapes=[pltpu.VMEM((Bp, H), jnp.float32)],
    )

    return pl.pallas_call(
        _gru_kernel,
        out_shape=jax.ShapeDtypeStruct((T, Bp, H), jnp.float32),
        grid_spec=grid_spec,
        compiler_params=pltpu.CompilerParams(
            dimension_semantics=("arbitrary",)),   # recurrence -> sequential
    )(gx, whh_t_bf16, bhn)


# ----------------------------------------------------------------------------
# EncoderRNN forward
# ----------------------------------------------------------------------------
def encoder_rnn_forward(params, input_ids):
    """input_ids: (B, T) int32 token ids.

    Returns (output (B, T, H), hidden (1, B, H)) matching PyTorch semantics."""
    emb = params["embedding"]                        # (V, H)
    w_ih, w_hh = params["w_ih"], params["w_hh"]      # (3H, H) each
    b_ih, b_hh = params["b_ih"], params["b_hh"]      # (3H,) each
    B, T = input_ids.shape
    H = emb.shape[1]

    # TODO(synk): nn.Dropout treated as identity (eval mode); training-mode
    # dropout would use pltpu.prng_seed / pltpu.stateful_bernoulli in-kernel.

    # Gather embedding directly time-major: (T, B, H).
    x_tbh = jnp.take(emb, jnp.transpose(input_ids), axis=0)

    # Pad batch to the 8-sublane tile.
    Bp = max(8, ((B + 7) // 8) * 8)
    if Bp != B:
        x_tbh = jnp.pad(x_tbh, ((0, 0), (0, Bp - B), (0, 0)))

    # Hoisted input projection (single well-shaped matmul, off the serial
    # path): gx = x @ W_ih^T + b_ih + [b_hh_r, b_hh_z, 0].
    bias_x = b_ih + jnp.concatenate(
        [b_hh[:2 * H], jnp.zeros((H,), b_hh.dtype)])
    gx = (x_tbh @ jnp.transpose(w_ih) + bias_x).astype(jnp.float32)  # (T,Bp,3H)

    bhn = b_hh[2 * H:].reshape(1, H).astype(jnp.float32)
    whh_t_bf16 = jnp.transpose(w_hh).astype(jnp.bfloat16)            # (H, 3H)

    out_tbh = _gru_recurrence(gx, whh_t_bf16, bhn)                   # (T,Bp,H)

    output = jnp.transpose(out_tbh[:, :B, :], (1, 0, 2))             # (B,T,H)
    hidden = out_tbh[T - 1, :B, :][None, :, :]                       # (1,B,H)
    return output, hidden


# ----------------------------------------------------------------------------
# Pure-JAX reference (for a sanity check)
# ----------------------------------------------------------------------------
def gru_reference(x_tbh, w_ih, w_hh, b_ih, b_hh):
    T, B, H = x_tbh.shape

    def step(h, x):
        gx = x @ w_ih.T + b_ih
        gh = h @ w_hh.T + b_hh
        r = jax.nn.sigmoid(gx[:, :H] + gh[:, :H])
        z = jax.nn.sigmoid(gx[:, H:2 * H] + gh[:, H:2 * H])
        n = jnp.tanh(gx[:, 2 * H:] + r * gh[:, 2 * H:])
        h_new = (1.0 - z) * n + z * h
        return h_new, h_new

    h0 = jnp.zeros((B, H), jnp.float32)
    h_last, outs = jax.lax.scan(step, h0, x_tbh)
    return outs, h_last


# ----------------------------------------------------------------------------
# Deterministic parameter init (shapes from nn.Embedding / nn.GRU in __init__)
# ----------------------------------------------------------------------------
def init_params(key, input_size, hidden_size):
    k_emb, k_wih, k_whh, k_bih, k_bhh = jax.random.split(key, 5)
    bound = 1.0 / math.sqrt(hidden_size)
    return {
        "embedding": jax.random.normal(k_emb, (input_size, hidden_size),
                                       jnp.float32),
        "w_ih": jax.random.uniform(k_wih, (3 * hidden_size, hidden_size),
                                   jnp.float32, -bound, bound),
        "w_hh": jax.random.uniform(k_whh, (3 * hidden_size, hidden_size),
                                   jnp.float32, -bound, bound),
        "b_ih": jax.random.uniform(k_bih, (3 * hidden_size,),
                                   jnp.float32, -bound, bound),
        "b_hh": jax.random.uniform(k_bhh, (3 * hidden_size,),
                                   jnp.float32, -bound, bound),
    }


if __name__ == "__main__":
    VOCAB = 50        # input_size
    HIDDEN = 128      # hidden_size (matches module-level constant)
    BATCH = 2
    SEQ = 8

    key = jax.random.PRNGKey(0)
    k_params, k_ids = jax.random.split(key)
    params = init_params(k_params, VOCAB, HIDDEN)
    input_ids = jax.random.randint(k_ids, (BATCH, SEQ), 0, VOCAB, jnp.int32)

    output, hidden = encoder_rnn_forward(params, input_ids)
    output = jax.block_until_ready(output)
    hidden = jax.block_until_ready(hidden)

    assert output.shape == (BATCH, SEQ, HIDDEN)
    assert hidden.shape == (1, BATCH, HIDDEN)

    # sanity check against a pure-JAX GRU (f32); kernel uses bf16 matmul with
    # f32 accumulation, so tolerance is slightly looser.
    emb = jnp.take(params["embedding"], input_ids, axis=0)
    x_tbh = jnp.transpose(emb, (1, 0, 2))
    ref_out, ref_hid = gru_reference(x_tbh, params["w_ih"], params["w_hh"],
                                     params["b_ih"], params["b_hh"])
    assert jnp.allclose(jnp.transpose(ref_out, (1, 0, 2)), output,
                        atol=2e-2, rtol=2e-2)
    assert jnp.allclose(ref_hid[None], hidden, atol=2e-2, rtol=2e-2)

    print("KERNEL_OK")
</pallas_src>

<mosaic_0001>
module attributes {stable_mosaic.version = 11 : i64} {
  func.func @_gru_kernel(%arg0: i32, %arg1: memref<8x8x384xf32, #tpu.memory_space<vmem>>, %arg2: memref<128x384xbf16, #tpu.memory_space<vmem>>, %arg3: memref<1x128xf32, #tpu.memory_space<vmem>>, %arg4: memref<8x8x128xf32, #tpu.memory_space<vmem>>, %arg5: memref<8x128xf32, #tpu.memory_space<vmem>>) attributes {dimension_semantics = [#tpu.dimension_semantics<arbitrary>], iteration_bounds = array<i64: 1>, scalar_prefetch = 0 : i64, scratch_operands = 1 : i64, tpu.core_type = #tpu.core_type<tc>, window_params = [{transform_indices = @transform_0, window_bounds = array<i64: 8, 8, 384>}, {pipeline_mode = #tpu.pipeline_mode<synchronous>, transform_indices = @transform_1, window_bounds = array<i64: 128, 384>}, {pipeline_mode = #tpu.pipeline_mode<synchronous>, transform_indices = @transform_2, window_bounds = array<i64: 1, 128>}, {transform_indices = @transform_3, window_bounds = array<i64: 8, 8, 128>}]} {
    %c0_i32 = arith.constant 0 : i32
    %0 = arith.cmpi eq, %arg0, %c0_i32 : i32
    %1 = arith.extui %0 : i1 to i32
    %c0_i32_0 = arith.constant 0 : i32
    %2 = arith.cmpi ne, %1, %c0_i32_0 : i32
    scf.if %2 {
      %cst_80 = arith.constant 0.000000e+00 : f32
      %287 = vector.broadcast %cst_80 : f32 to vector<8x128xf32>
      %c0_81 = arith.constant 0 : index
      %c0_82 = arith.constant 0 : index
      %288 = vector.load %arg5[%c0_81, %c0_82] : memref<8x128xf32, #tpu.memory_space<vmem>>, vector<8x128xf32>
      tpu.vector_store %arg5[%c0_81, %c0_82], %287 {strides = array<i32>} : memref<8x128xf32, #tpu.memory_space<vmem>>, vector<8x128xf32>,
    } else {
    }
    %c0 = arith.constant 0 : index
    %c0_1 = arith.constant 0 : index
    %3 = vector.load %arg2[%c0, %c0_1] : memref<128x384xbf16, #tpu.memory_space<vmem>>, vector<128x384xbf16>
    %c0_2 = arith.constant 0 : index
    %c0_3 = arith.constant 0 : index
    %4 = vector.load %arg3[%c0_2, %c0_3] : memref<1x128xf32, #tpu.memory_space<vmem>>, vector<1x128xf32>
    %c0_4 = arith.constant 0 : index
    %c0_5 = arith.constant 0 : index
    %5 = vector.load %arg5[%c0_4, %c0_5] : memref<8x128xf32, #tpu.memory_space<vmem>>, vector<8x128xf32>
    %c0_6 = arith.constant 0 : index
    %c0_7 = arith.constant 0 : index
    %c0_8 = arith.constant 0 : index
    %6 = vector.load %arg1[%c0_6, %c0_7, %c0_8] : memref<8x8x384xf32, #tpu.memory_space<vmem>>, vector<1x8x384xf32>
    %7 = vector.shape_cast %6 : vector<1x8x384xf32> to vector<8x384xf32>
    %8 = arith.truncf %5 : vector<8x128xf32> to vector<8x128xbf16>
    %cst = arith.constant dense<0.000000e+00> : vector<8x384xf32>
    %9 = tpu.matmul %8, %3, %cst {dimension_numbers = #tpu.dot_dimension_numbers<[1], [0], [0], [1], [0, 0, 1, 1], [], []>} : vector<8x128xbf16>, vector<128x384xbf16>, vector<8x384xf32> -> vector<8x384xf32>
    %10 = vector.extract_strided_slice %7 {offsets = [0, 0], sizes = [8, 128], strides = [1, 1]} : vector<8x384xf32> to vector<8x128xf32>
    %11 = vector.extract_strided_slice %9 {offsets = [0, 0], sizes = [8, 128], strides = [1, 1]} : vector<8x384xf32> to vector<8x128xf32>
    %12 = arith.addf %10, %11 : vector<8x128xf32>
    %13 = arith.negf %12 : vector<8x128xf32>
    %14 = math.exp %13 : vector<8x128xf32>
    %cst_9 = arith.constant 1.000000e+00 : f32
    %15 = vector.broadcast %cst_9 : f32 to vector<8x128xf32>
    %16 = arith.addf %15, %14 : vector<8x128xf32>
    %17 = arith.divf %15, %16 : vector<8x128xf32>
    %18 = vector.extract_strided_slice %7 {offsets = [0, 128], sizes = [8, 128], strides = [1, 1]} : vector<8x384xf32> to vector<8x128xf32>
    %19 = vector.extract_strided_slice %9 {offsets = [0, 128], sizes = [8, 128], strides = [1, 1]} : vector<8x384xf32> to vector<8x128xf32>
    %20 = arith.addf %18, %19 : vector<8x128xf32>
    %21 = arith.negf %20 : vector<8x128xf32>
    %22 = math.exp %21 : vector<8x128xf32>
    %cst_10 = arith.constant 1.000000e+00 : f32
    %23 = vector.broadcast %cst_10 : f32 to vector<8x128xf32>
    %24 = arith.addf %23, %22 : vector<8x128xf32>
    %25 = arith.divf %23, %24 : vector<8x128xf32>
    %26 = vector.extract_strided_slice %7 {offsets = [0, 256], sizes = [8, 128], strides = [1, 1]} : vector<8x384xf32> to vector<8x128xf32>
    %27 = vector.extract_strided_slice %9 {offsets = [0, 256], sizes = [8, 128], strides = [1, 1]} : vector<8x384xf32> to vector<8x128xf32>
    %28 = vector.broadcast %4 : vector<1x128xf32> to vector<8x128xf32>
    %29 = arith.addf %27, %28 : vector<8x128xf32>
    %30 = arith.mulf %17, %29 : vector<8x128xf32>
    %31 = arith.addf %26, %30 : vector<8x128xf32>
    %32 = math.tanh %31 : vector<8x128xf32>
    %cst_11 = arith.constant 1.000000e+00 : f32
    %33 = vector.broadcast %cst_11 : f32 to vector<8x128xf32>
    %34 = arith.subf %33, %25 : vector<8x128xf32>
    %35 = arith.mulf %34, %32 : vector<8x128xf32>
    %36 = arith.mulf %25, %5 : vector<8x128xf32>
    %37 = arith.addf %35, %36 : vector<8x128xf32>
    %c0_12 = arith.constant 0 : index
    %c0_13 = arith.constant 0 : index
    %c0_14 = arith.constant 0 : index
    %38 = vector.load %arg4[%c0_12, %c0_13, %c0_14] : memref<8x8x128xf32, #tpu.memory_space<vmem>>, vector<1x8x128xf32>
    %39 = vector.shape_cast %38 : vector<1x8x128xf32> to vector<8x128xf32>
    %40 = vector.shape_cast %37 : vector<8x128xf32> to vector<1x8x128xf32>
    tpu.vector_store %arg4[%c0_12, %c0_13, %c0_14], %40 {strides = array<i32>} : memref<8x8x128xf32, #tpu.memory_space<vmem>>, vector<1x8x128xf32>,
    %c1 = arith.constant 1 : index
    %c0_15 = arith.constant 0 : index
    %c0_16 = arith.constant 0 : index
    %41 = vector.load %arg1[%c1, %c0_15, %c0_16] : memref<8x8x384xf32, #tpu.memory_space<vmem>>, vector<1x8x384xf32>
    %42 = vector.shape_cast %41 : vector<1x8x384xf32> to vector<8x384xf32>
    %43 = arith.truncf %37 : vector<8x128xf32> to vector<8x128xbf16>
    %cst_17 = arith.constant dense<0.000000e+00> : vector<8x384xf32>
    %44 = tpu.matmul %43, %3, %cst_17 {dimension_numbers = #tpu.dot_dimension_numbers<[1], [0], [0], [1], [0, 0, 1, 1], [], []>} : vector<8x128xbf16>, vector<128x384xbf16>, vector<8x384xf32> -> vector<8x384xf32>
    %45 = vector.extract_strided_slice %42 {offsets = [0, 0], sizes = [8, 128], strides = [1, 1]} : vector<8x384xf32> to vector<8x128xf32>
    %46 = vector.extract_strided_slice %44 {offsets = [0, 0], sizes = [8, 128], strides = [1, 1]} : vector<8x384xf32> to vector<8x128xf32>
    %47 = arith.addf %45, %46 : vector<8x128xf32>
    %48 = arith.negf %47 : vector<8x128xf32>
    %49 = math.exp %48 : vector<8x128xf32>
    %cst_18 = arith.constant 1.000000e+00 : f32
    %50 = vector.broadcast %cst_18 : f32 to vector<8x128xf32>
    %51 = arith.addf %50, %49 : vector<8x128xf32>
    %52 = arith.divf %50, %51 : vector<8x128xf32>
    %53 = vector.extract_strided_slice %42 {offsets = [0, 128], sizes = [8, 128], strides = [1, 1]} : vector<8x384xf32> to vector<8x128xf32>
    %54 = vector.extract_strided_slice %44 {offsets = [0, 128], sizes = [8, 128], strides = [1, 1]} : vector<8x384xf32> to vector<8x128xf32>
    %55 = arith.addf %53, %54 : vector<8x128xf32>
    %56 = arith.negf %55 : vector<8x128xf32>
    %57 = math.exp %56 : vector<8x128xf32>
    %cst_19 = arith.constant 1.000000e+00 : f32
    %58 = vector.broadcast %cst_19 : f32 to vector<8x128xf32>
    %59 = arith.addf %58, %57 : vector<8x128xf32>
    %60 = arith.divf %58, %59 : vector<8x128xf32>
    %61 = vector.extract_strided_slice %42 {offsets = [0, 256], sizes = [8, 128], strides = [1, 1]} : vector<8x384xf32> to vector<8x128xf32>
    %62 = vector.extract_strided_slice %44 {offsets = [0, 256], sizes = [8, 128], strides = [1, 1]} : vector<8x384xf32> to vector<8x128xf32>
    %63 = vector.broadcast %4 : vector<1x128xf32> to vector<8x128xf32>
    %64 = arith.addf %62, %63 : vector<8x128xf32>
    %65 = arith.mulf %52, %64 : vector<8x128xf32>
    %66 = arith.addf %61, %65 : vector<8x128xf32>
    %67 = math.tanh %66 : vector<8x128xf32>
    %cst_20 = arith.constant 1.000000e+00 : f32
    %68 = vector.broadcast %cst_20 : f32 to vector<8x128xf32>
    %69 = arith.subf %68, %60 : vector<8x128xf32>
    %70 = arith.mulf %69, %67 : vector<8x128xf32>
    %71 = arith.mulf %60, %37 : vector<8x128xf32>
    %72 = arith.addf %70, %71 : vector<8x128xf32>
    %c1_21 = arith.constant 1 : index
    %c0_22 = arith.constant 0 : index
    %c0_23 = arith.constant 0 : index
    %73 = vector.load %arg4[%c1_21, %c0_22, %c0_23] : memref<8x8x128xf32, #tpu.memory_space<vmem>>, vector<1x8x128xf32>
    %74 = vector.shape_cast %73 : vector<1x8x128xf32> to vector<8x128xf32>
    %75 = vector.shape_cast %72 : vector<8x128xf32> to vector<1x8x128xf32>
    tpu.vector_store %arg4[%c1_21, %c0_22, %c0_23], %75 {strides = array<i32>} : memref<8x8x128xf32, #tpu.memory_space<vmem>>, vector<1x8x128xf32>,
    %c2 = arith.constant 2 : index
    %c0_24 = arith.constant 0 : index
    %c0_25 = arith.constant 0 : index
    %76 = vector.load %arg1[%c2, %c0_24, %c0_25] : memref<8x8x384xf32, #tpu.memory_space<vmem>>, vector<1x8x384xf32>
    %77 = vector.shape_cast %76 : vector<1x8x384xf32> to vector<8x384xf32>
    %78 = arith.truncf %72 : vector<8x128xf32> to vector<8x128xbf16>
    %cst_26 = arith.constant dense<0.000000e+00> : vector<8x384xf32>
    %79 = tpu.matmul %78, %3, %cst_26 {dimension_numbers = #tpu.dot_dimension_numbers<[1], [0], [0], [1], [0, 0, 1, 1], [], []>} : vector<8x128xbf16>, vector<128x384xbf16>, vector<8x384xf32> -> vector<8x384xf32>
    %80 = vector.extract_strided_slice %77 {offsets = [0, 0], sizes = [8, 128], strides = [1, 1]} : vector<8x384xf32> to vector<8x128xf32>
    %81 = vector.extract_strided_slice %79 {offsets = [0, 0], sizes = [8, 128], strides = [1, 1]} : vector<8x384xf32> to vector<8x128xf32>
    %82 = arith.addf %80, %81 : vector<8x128xf32>
    %83 = arith.negf %82 : vector<8x128xf32>
    %84 = math.exp %83 : vector<8x128xf32>
    %cst_27 = arith.constant 1.000000e+00 : f32
    %85 = vector.broadcast %cst_27 : f32 to vector<8x128xf32>
    %86 = arith.addf %85, %84 : vector<8x128xf32>
    %87 = arith.divf %85, %86 : vector<8x128xf32>
    %88 = vector.extract_strided_slice %77 {offsets = [0, 128], sizes = [8, 128], strides = [1, 1]} : vector<8x384xf32> to vector<8x128xf32>
    %89 = vector.extract_strided_slice %79 {offsets = [0, 128], sizes = [8, 128], strides = [1, 1]} : vector<8x384xf32> to vector<8x128xf32>
    %90 = arith.addf %88, %89 : vector<8x128xf32>
    %91 = arith.negf %90 : vector<8x128xf32>
    %92 = math.exp %91 : vector<8x128xf32>
    %cst_28 = arith.constant 1.000000e+00 : f32
    %93 = vector.broadcast %cst_28 : f32 to vector<8x128xf32>
    %94 = arith.addf %93, %92 : vector<8x128xf32>
    %95 = arith.divf %93, %94 : vector<8x128xf32>
    %96 = vector.extract_strided_slice %77 {offsets = [0, 256], sizes = [8, 128], strides = [1, 1]} : vector<8x384xf32> to vector<8x128xf32>
    %97 = vector.extract_strided_slice %79 {offsets = [0, 256], sizes = [8, 128], strides = [1, 1]} : vector<8x384xf32> to vector<8x128xf32>
    %98 = vector.broadcast %4 : vector<1x128xf32> to vector<8x128xf32>
    %99 = arith.addf %97, %98 : vector<8x128xf32>
    %100 = arith.mulf %87, %99 : vector<8x128xf32>
    %101 = arith.addf %96, %100 : vector<8x128xf32>
    %102 = math.tanh %101 : vector<8x128xf32>
    %cst_29 = arith.constant 1.000000e+00 : f32
    %103 = vector.broadcast %cst_29 : f32 to vector<8x128xf32>
    %104 = arith.subf %103, %95 : vector<8x128xf32>
    %105 = arith.mulf %104, %102 : vector<8x128xf32>
    %106 = arith.mulf %95, %72 : vector<8x128xf32>
    %107 = arith.addf %105, %106 : vector<8x128xf32>
    %c2_30 = arith.constant 2 : index
    %c0_31 = arith.constant 0 : index
    %c0_32 = arith.constant 0 : index
    %108 = vector.load %arg4[%c2_30, %c0_31, %c0_32] : memref<8x8x128xf32, #tpu.memory_space<vmem>>, vector<1x8x128xf32>
    %109 = vector.shape_cast %108 : vector<1x8x128xf32> to vector<8x128xf32>
    %110 = vector.shape_cast %107 : vector<8x128xf32> to vector<1x8x128xf32>
    tpu.vector_store %arg4[%c2_30, %c0_31, %c0_32], %110 {strides = array<i32>} : memref<8x8x128xf32, #tpu.memory_space<vmem>>, vector<1x8x128xf32>,
    %c3 = arith.constant 3 : index
    %c0_33 = arith.constant 0 : index
    %c0_34 = arith.constant 0 : index
    %111 = vector.load %arg1[%c3, %c0_33, %c0_34] : memref<8x8x384xf32, #tpu.memory_space<vmem>>, vector<1x8x384xf32>
    %112 = vector.shape_cast %111 : vector<1x8x384xf32> to vector<8x384xf32>
    %113 = arith.truncf %107 : vector<8x128xf32> to vector<8x128xbf16>
    %cst_35 = arith.constant dense<0.000000e+00> : vector<8x384xf32>
    %114 = tpu.matmul %113, %3, %cst_35 {dimension_numbers = #tpu.dot_dimension_numbers<[1], [0], [0], [1], [0, 0, 1, 1], [], []>} : vector<8x128xbf16>, vector<128x384xbf16>, vector<8x384xf32> -> vector<8x384xf32>
    %115 = vector.extract_strided_slice %112 {offsets = [0, 0], sizes = [8, 128], strides = [1, 1]} : vector<8x384xf32> to vector<8x128xf32>
    %116 = vector.extract_strided_slice %114 {offsets = [0, 0], sizes = [8, 128], strides = [1, 1]} : vector<8x384xf32> to vector<8x128xf32>
    %117 = arith.addf %115, %116 : vector<8x128xf32>
    %118 = arith.negf %117 : vector<8x128xf32>
    %119 = math.exp %118 : vector<8x128xf32>
    %cst_36 = arith.constant 1.000000e+00 : f32
    %120 = vector.broadcast %cst_36 : f32 to vector<8x128xf32>
    %121 = arith.addf %120, %119 : vector<8x128xf32>
    %122 = arith.divf %120, %121 : vector<8x128xf32>
    %123 = vector.extract_strided_slice %112 {offsets = [0, 128], sizes = [8, 128], strides = [1, 1]} : vector<8x384xf32> to vector<8x128xf32>
    %124 = vector.extract_strided_slice %114 {offsets = [0, 128], sizes = [8, 128], strides = [1, 1]} : vector<8x384xf32> to vector<8x128xf32>
    %125 = arith.addf %123, %124 : vector<8x128xf32>
    %126 = arith.negf %125 : vector<8x128xf32>
    %127 = math.exp %126 : vector<8x128xf32>
    %cst_37 = arith.constant 1.000000e+00 : f32
    %128 = vector.broadcast %cst_37 : f32 to vector<8x128xf32>
    %129 = arith.addf %128, %127 : vector<8x128xf32>
    %130 = arith.divf %128, %129 : vector<8x128xf32>
    %131 = vector.extract_strided_slice %112 {offsets = [0, 256], sizes = [8, 128], strides = [1, 1]} : vector<8x384xf32> to vector<8x128xf32>
    %132 = vector.extract_strided_slice %114 {offsets = [0, 256], sizes = [8, 128], strides = [1, 1]} : vector<8x384xf32> to vector<8x128xf32>
    %133 = vector.broadcast %4 : vector<1x128xf32> to vector<8x128xf32>
    %134 = arith.addf %132, %133 : vector<8x128xf32>
    %135 = arith.mulf %122, %134 : vector<8x128xf32>
    %136 = arith.addf %131, %135 : vector<8x128xf32>
    %137 = math.tanh %136 : vector<8x128xf32>
    %cst_38 = arith.constant 1.000000e+00 : f32
    %138 = vector.broadcast %cst_38 : f32 to vector<8x128xf32>
    %139 = arith.subf %138, %130 : vector<8x128xf32>
    %140 = arith.mulf %139, %137 : vector<8x128xf32>
    %141 = arith.mulf %130, %107 : vector<8x128xf32>
    %142 = arith.addf %140, %141 : vector<8x128xf32>
    %c3_39 = arith.constant 3 : index
    %c0_40 = arith.constant 0 : index
    %c0_41 = arith.constant 0 : index
    %143 = vector.load %arg4[%c3_39, %c0_40, %c0_41] : memref<8x8x128xf32, #tpu.memory_space<vmem>>, vector<1x8x128xf32>
    %144 = vector.shape_cast %143 : vector<1x8x128xf32> to vector<8x128xf32>
    %145 = vector.shape_cast %142 : vector<8x128xf32> to vector<1x8x128xf32>
    tpu.vector_store %arg4[%c3_39, %c0_40, %c0_41], %145 {strides = array<i32>} : memref<8x8x128xf32, #tpu.memory_space<vmem>>, vector<1x8x128xf32>,
    %c4 = arith.constant 4 : index
    %c0_42 = arith.constant 0 : index
    %c0_43 = arith.constant 0 : index
    %146 = vector.load %arg1[%c4, %c0_42, %c0_43] : memref<8x8x384xf32, #tpu.memory_space<vmem>>, vector<1x8x384xf32>
    %147 = vector.shape_cast %146 : vector<1x8x384xf32> to vector<8x384xf32>
    %148 = arith.truncf %142 : vector<8x128xf32> to vector<8x128xbf16>
    %cst_44 = arith.constant dense<0.000000e+00> : vector<8x384xf32>
    %149 = tpu.matmul %148, %3, %cst_44 {dimension_numbers = #tpu.dot_dimension_numbers<[1], [0], [0], [1], [0, 0, 1, 1], [], []>} : vector<8x128xbf16>, vector<128x384xbf16>, vector<8x384xf32> -> vector<8x384xf32>
    %150 = vector.extract_strided_slice %147 {offsets = [0, 0], sizes = [8, 128], strides = [1, 1]} : vector<8x384xf32> to vector<8x128xf32>
    %151 = vector.extract_strided_slice %149 {offsets = [0, 0], sizes = [8, 128], strides = [1, 1]} : vector<8x384xf32> to vector<8x128xf32>
    %152 = arith.addf %150, %151 : vector<8x128xf32>
    %153 = arith.negf %152 : vector<8x128xf32>
    %154 = math.exp %153 : vector<8x128xf32>
    %cst_45 = arith.constant 1.000000e+00 : f32
    %155 = vector.broadcast %cst_45 : f32 to vector<8x128xf32>
    %156 = arith.addf %155, %154 : vector<8x128xf32>
    %157 = arith.divf %155, %156 : vector<8x128xf32>
    %158 = vector.extract_strided_slice %147 {offsets = [0, 128], sizes = [8, 128], strides = [1, 1]} : vector<8x384xf32> to vector<8x128xf32>
    %159 = vector.extract_strided_slice %149 {offsets = [0, 128], sizes = [8, 128], strides = [1, 1]} : vector<8x384xf32> to vector<8x128xf32>
    %160 = arith.addf %158, %159 : vector<8x128xf32>
    %161 = arith.negf %160 : vector<8x128xf32>
    %162 = math.exp %161 : vector<8x128xf32>
    %cst_46 = arith.constant 1.000000e+00 : f32
    %163 = vector.broadcast %cst_46 : f32 to vector<8x128xf32>
    %164 = arith.addf %163, %162 : vector<8x128xf32>
    %165 = arith.divf %163, %164 : vector<8x128xf32>
    %166 = vector.extract_strided_slice %147 {offsets = [0, 256], sizes = [8, 128], strides = [1, 1]} : vector<8x384xf32> to vector<8x128xf32>
    %167 = vector.extract_strided_slice %149 {offsets = [0, 256], sizes = [8, 128], strides = [1, 1]} : vector<8x384xf32> to vector<8x128xf32>
    %168 = vector.broadcast %4 : vector<1x128xf32> to vector<8x128xf32>
    %169 = arith.addf %167, %168 : vector<8x128xf32>
    %170 = arith.mulf %157, %169 : vector<8x128xf32>
    %171 = arith.addf %166, %170 : vector<8x128xf32>
    %172 = math.tanh %171 : vector<8x128xf32>
    %cst_47 = arith.constant 1.000000e+00 : f32
    %173 = vector.broadcast %cst_47 : f32 to vector<8x128xf32>
    %174 = arith.subf %173, %165 : vector<8x128xf32>
    %175 = arith.mulf %174, %172 : vector<8x128xf32>
    %176 = arith.mulf %165, %142 : vector<8x128xf32>
    %177 = arith.addf %175, %176 : vector<8x128xf32>
    %c4_48 = arith.constant 4 : index
    %c0_49 = arith.constant 0 : index
    %c0_50 = arith.constant 0 : index
    %178 = vector.load %arg4[%c4_48, %c0_49, %c0_50] : memref<8x8x128xf32, #tpu.memory_space<vmem>>, vector<1x8x128xf32>
    %179 = vector.shape_cast %178 : vector<1x8x128xf32> to vector<8x128xf32>
    %180 = vector.shape_cast %177 : vector<8x128xf32> to vector<1x8x128xf32>
    tpu.vector_store %arg4[%c4_48, %c0_49, %c0_50], %180 {strides = array<i32>} : memref<8x8x128xf32, #tpu.memory_space<vmem>>, vector<1x8x128xf32>,
    %c5 = arith.constant 5 : index
    %c0_51 = arith.constant 0 : index
    %c0_52 = arith.constant 0 : index
    %181 = vector.load %arg1[%c5, %c0_51, %c0_52] : memref<8x8x384xf32, #tpu.memory_space<vmem>>, vector<1x8x384xf32>
    %182 = vector.shape_cast %181 : vector<1x8x384xf32> to vector<8x384xf32>
    %183 = arith.truncf %177 : vector<8x128xf32> to vector<8x128xbf16>
    %cst_53 = arith.constant dense<0.000000e+00> : vector<8x384xf32>
    %184 = tpu.matmul %183, %3, %cst_53 {dimension_numbers = #tpu.dot_dimension_numbers<[1], [0], [0], [1], [0, 0, 1, 1], [], []>} : vector<8x128xbf16>, vector<128x384xbf16>, vector<8x384xf32> -> vector<8x384xf32>
    %185 = vector.extract_strided_slice %182 {offsets = [0, 0], sizes = [8, 128], strides = [1, 1]} : vector<8x384xf32> to vector<8x128xf32>
    %186 = vector.extract_strided_slice %184 {offsets = [0, 0], sizes = [8, 128], strides = [1, 1]} : vector<8x384xf32> to vector<8x128xf32>
    %187 = arith.addf %185, %186 : vector<8x128xf32>
    %188 = arith.negf %187 : vector<8x128xf32>
    %189 = math.exp %188 : vector<8x128xf32>
    %cst_54 = arith.constant 1.000000e+00 : f32
    %190 = vector.broadcast %cst_54 : f32 to vector<8x128xf32>
    %191 = arith.addf %190, %189 : vector<8x128xf32>
    %192 = arith.divf %190, %191 : vector<8x128xf32>
    %193 = vector.extract_strided_slice %182 {offsets = [0, 128], sizes = [8, 128], strides = [1, 1]} : vector<8x384xf32> to vector<8x128xf32>
    %194 = vector.extract_strided_slice %184 {offsets = [0, 128], sizes = [8, 128], strides = [1, 1]} : vector<8x384xf32> to vector<8x128xf32>
    %195 = arith.addf %193, %194 : vector<8x128xf32>
    %196 = arith.negf %195 : vector<8x128xf32>
    %197 = math.exp %196 : vector<8x128xf32>
    %cst_55 = arith.constant 1.000000e+00 : f32
    %198 = vector.broadcast %cst_55 : f32 to vector<8x128xf32>
    %199 = arith.addf %198, %197 : vector<8x128xf32>
    %200 = arith.divf %198, %199 : vector<8x128xf32>
    %201 = vector.extract_strided_slice %182 {offsets = [0, 256], sizes = [8, 128], strides = [1, 1]} : vector<8x384xf32> to vector<8x128xf32>
    %202 = vector.extract_strided_slice %184 {offsets = [0, 256], sizes = [8, 128], strides = [1, 1]} : vector<8x384xf32> to vector<8x128xf32>
    %203 = vector.broadcast %4 : vector<1x128xf32> to vector<8x128xf32>
    %204 = arith.addf %202, %203 : vector<8x128xf32>
    %205 = arith.mulf %192, %204 : vector<8x128xf32>
    %206 = arith.addf %201, %205 : vector<8x128xf32>
    %207 = math.tanh %206 : vector<8x128xf32>
    %cst_56 = arith.constant 1.000000e+00 : f32
    %208 = vector.broadcast %cst_56 : f32 to vector<8x128xf32>
    %209 = arith.subf %208, %200 : vector<8x128xf32>
    %210 = arith.mulf %209, %207 : vector<8x128xf32>
    %211 = arith.mulf %200, %177 : vector<8x128xf32>
    %212 = arith.addf %210, %211 : vector<8x128xf32>
    %c5_57 = arith.constant 5 : index
    %c0_58 = arith.constant 0 : index
    %c0_59 = arith.constant 0 : index
    %213 = vector.load %arg4[%c5_57, %c0_58, %c0_59] : memref<8x8x128xf32, #tpu.memory_space<vmem>>, vector<1x8x128xf32>
    %214 = vector.shape_cast %213 : vector<1x8x128xf32> to vector<8x128xf32>
    %215 = vector.shape_cast %212 : vector<8x128xf32> to vector<1x8x128xf32>
    tpu.vector_store %arg4[%c5_57, %c0_58, %c0_59], %215 {strides = array<i32>} : memref<8x8x128xf32, #tpu.memory_space<vmem>>, vector<1x8x128xf32>,
    %c6 = arith.constant 6 : index
    %c0_60 = arith.constant 0 : index
    %c0_61 = arith.constant 0 : index
    %216 = vector.load %arg1[%c6, %c0_60, %c0_61] : memref<8x8x384xf32, #tpu.memory_space<vmem>>, vector<1x8x384xf32>
    %217 = vector.shape_cast %216 : vector<1x8x384xf32> to vector<8x384xf32>
    %218 = arith.truncf %212 : vector<8x128xf32> to vector<8x128xbf16>
    %cst_62 = arith.constant dense<0.000000e+00> : vector<8x384xf32>
    %219 = tpu.matmul %218, %3, %cst_62 {dimension_numbers = #tpu.dot_dimension_numbers<[1], [0], [0], [1], [0, 0, 1, 1], [], []>} : vector<8x128xbf16>, vector<128x384xbf16>, vector<8x384xf32> -> vector<8x384xf32>
    %220 = vector.extract_strided_slice %217 {offsets = [0, 0], sizes = [8, 128], strides = [1, 1]} : vector<8x384xf32> to vector<8x128xf32>
    %221 = vector.extract_strided_slice %219 {offsets = [0, 0], sizes = [8, 128], strides = [1, 1]} : vector<8x384xf32> to vector<8x128xf32>
    %222 = arith.addf %220, %221 : vector<8x128xf32>
    %223 = arith.negf %222 : vector<8x128xf32>
    %224 = math.exp %223 : vector<8x128xf32>
    %cst_63 = arith.constant 1.000000e+00 : f32
    %225 = vector.broadcast %cst_63 : f32 to vector<8x128xf32>
    %226 = arith.addf %225, %224 : vector<8x128xf32>
    %227 = arith.divf %225, %226 : vector<8x128xf32>
    %228 = vector.extract_strided_slice %217 {offsets = [0, 128], sizes = [8, 128], strides = [1, 1]} : vector<8x384xf32> to vector<8x128xf32>
    %229 = vector.extract_strided_slice %219 {offsets = [0, 128], sizes = [8, 128], strides = [1, 1]} : vector<8x384xf32> to vector<8x128xf32>
    %230 = arith.addf %228, %229 : vector<8x128xf32>
    %231 = arith.negf %230 : vector<8x128xf32>
    %232 = math.exp %231 : vector<8x128xf32>
    %cst_64 = arith.constant 1.000000e+00 : f32
    %233 = vector.broadcast %cst_64 : f32 to vector<8x128xf32>
    %234 = arith.addf %233, %232 : vector<8x128xf32>
    %235 = arith.divf %233, %234 : vector<8x128xf32>
    %236 = vector.extract_strided_slice %217 {offsets = [0, 256], sizes = [8, 128], strides = [1, 1]} : vector<8x384xf32> to vector<8x128xf32>
    %237 = vector.extract_strided_slice %219 {offsets = [0, 256], sizes = [8, 128], strides = [1, 1]} : vector<8x384xf32> to vector<8x128xf32>
    %238 = vector.broadcast %4 : vector<1x128xf32> to vector<8x128xf32>
    %239 = arith.addf %237, %238 : vector<8x128xf32>
    %240 = arith.mulf %227, %239 : vector<8x128xf32>
    %241 = arith.addf %236, %240 : vector<8x128xf32>
    %242 = math.tanh %241 : vector<8x128xf32>
    %cst_65 = arith.constant 1.000000e+00 : f32
    %243 = vector.broadcast %cst_65 : f32 to vector<8x128xf32>
    %244 = arith.subf %243, %235 : vector<8x128xf32>
    %245 = arith.mulf %244, %242 : vector<8x128xf32>
    %246 = arith.mulf %235, %212 : vector<8x128xf32>
    %247 = arith.addf %245, %246 : vector<8x128xf32>
    %c6_66 = arith.constant 6 : index
    %c0_67 = arith.constant 0 : index
    %c0_68 = arith.constant 0 : index
    %248 = vector.load %arg4[%c6_66, %c0_67, %c0_68] : memref<8x8x128xf32, #tpu.memory_space<vmem>>, vector<1x8x128xf32>
    %249 = vector.shape_cast %248 : vector<1x8x128xf32> to vector<8x128xf32>
    %250 = vector.shape_cast %247 : vector<8x128xf32> to vector<1x8x128xf32>
    tpu.vector_store %arg4[%c6_66, %c0_67, %c0_68], %250 {strides = array<i32>} : memref<8x8x128xf32, #tpu.memory_space<vmem>>, vector<1x8x128xf32>,
    %c7 = arith.constant 7 : index
    %c0_69 = arith.constant 0 : index
    %c0_70 = arith.constant 0 : index
    %251 = vector.load %arg1[%c7, %c0_69, %c0_70] : memref<8x8x384xf32, #tpu.memory_space<vmem>>, vector<1x8x384xf32>
    %252 = vector.shape_cast %251 : vector<1x8x384xf32> to vector<8x384xf32>
    %253 = arith.truncf %247 : vector<8x128xf32> to vector<8x128xbf16>
    %cst_71 = arith.constant dense<0.000000e+00> : vector<8x384xf32>
    %254 = tpu.matmul %253, %3, %cst_71 {dimension_numbers = #tpu.dot_dimension_numbers<[1], [0], [0], [1], [0, 0, 1, 1], [], []>} : vector<8x128xbf16>, vector<128x384xbf16>, vector<8x384xf32> -> vector<8x384xf32>
    %255 = vector.extract_strided_slice %252 {offsets = [0, 0], sizes = [8, 128], strides = [1, 1]} : vector<8x384xf32> to vector<8x128xf32>
    %256 = vector.extract_strided_slice %254 {offsets = [0, 0], sizes = [8, 128], strides = [1, 1]} : vector<8x384xf32> to vector<8x128xf32>
    %257 = arith.addf %255, %256 : vector<8x128xf32>
    %258 = arith.negf %257 : vector<8x128xf32>
    %259 = math.exp %258 : vector<8x128xf32>
    %cst_72 = arith.constant 1.000000e+00 : f32
    %260 = vector.broadcast %cst_72 : f32 to vector<8x128xf32>
    %261 = arith.addf %260, %259 : vector<8x128xf32>
    %262 = arith.divf %260, %261 : vector<8x128xf32>
    %263 = vector.extract_strided_slice %252 {offsets = [0, 128], sizes = [8, 128], strides = [1, 1]} : vector<8x384xf32> to vector<8x128xf32>
    %264 = vector.extract_strided_slice %254 {offsets = [0, 128], sizes = [8, 128], strides = [1, 1]} : vector<8x384xf32> to vector<8x128xf32>
    %265 = arith.addf %263, %264 : vector<8x128xf32>
    %266 = arith.negf %265 : vector<8x128xf32>
    %267 = math.exp %266 : vector<8x128xf32>
    %cst_73 = arith.constant 1.000000e+00 : f32
    %268 = vector.broadcast %cst_73 : f32 to vector<8x128xf32>
    %269 = arith.addf %268, %267 : vector<8x128xf32>
    %270 = arith.divf %268, %269 : vector<8x128xf32>
    %271 = vector.extract_strided_slice %252 {offsets = [0, 256], sizes = [8, 128], strides = [1, 1]} : vector<8x384xf32> to vector<8x128xf32>
    %272 = vector.extract_strided_slice %254 {offsets = [0, 256], sizes = [8, 128], strides = [1, 1]} : vector<8x384xf32> to vector<8x128xf32>
    %273 = vector.broadcast %4 : vector<1x128xf32> to vector<8x128xf32>
    %274 = arith.addf %272, %273 : vector<8x128xf32>
    %275 = arith.mulf %262, %274 : vector<8x128xf32>
    %276 = arith.addf %271, %275 : vector<8x128xf32>
    %277 = math.tanh %276 : vector<8x128xf32>
    %cst_74 = arith.constant 1.000000e+00 : f32
    %278 = vector.broadcast %cst_74 : f32 to vector<8x128xf32>
    %279 = arith.subf %278, %270 : vector<8x128xf32>
    %280 = arith.mulf %279, %277 : vector<8x128xf32>
    %281 = arith.mulf %270, %247 : vector<8x128xf32>
    %282 = arith.addf %280, %281 : vector<8x128xf32>
    %c7_75 = arith.constant 7 : index
    %c0_76 = arith.constant 0 : index
    %c0_77 = arith.constant 0 : index
    %283 = vector.load %arg4[%c7_75, %c0_76, %c0_77] : memref<8x8x128xf32, #tpu.memory_space<vmem>>, vector<1x8x128xf32>
    %284 = vector.shape_cast %283 : vector<1x8x128xf32> to vector<8x128xf32>
    %285 = vector.shape_cast %282 : vector<8x128xf32> to vector<1x8x128xf32>
    tpu.vector_store %arg4[%c7_75, %c0_76, %c0_77], %285 {strides = array<i32>} : memref<8x8x128xf32, #tpu.memory_space<vmem>>, vector<1x8x128xf32>,
    %c0_78 = arith.constant 0 : index
    %c0_79 = arith.constant 0 : index
    %286 = vector.load %arg5[%c0_78, %c0_79] : memref<8x128xf32, #tpu.memory_space<vmem>>, vector<8x128xf32>
    tpu.vector_store %arg5[%c0_78, %c0_79], %282 {strides = array<i32>} : memref<8x128xf32, #tpu.memory_space<vmem>>, vector<8x128xf32>,
    return
  }
  func.func @transform_0(%arg0: i32) -> (i32, i32, i32) {
    %c0_i32 = arith.constant 0 : i32
    %c0_i32_0 = arith.constant 0 : i32
    %c0_i32_1 = arith.constant 0 : i32
    return %arg0, %c0_i32, %c0_i32_0 : i32, i32, i32
  }
  func.func @transform_1(%arg0: i32) -> (i32, i32) {
    %c0_i32 = arith.constant 0 : i32
    %c0_i32_0 = arith.constant 0 : i32
    %c0_i32_1 = arith.constant 0 : i32
    return %c0_i32, %c0_i32_0 : i32, i32
  }
  func.func @transform_2(%arg0: i32) -> (i32, i32) {
    %c0_i32 = arith.constant 0 : i32
    %c0_i32_0 = arith.constant 0 : i32
    %c0_i32_1 = arith.constant 0 : i32
    return %c0_i32, %c0_i32_0 : i32, i32
  }
  func.func @transform_3(%arg0: i32) -> (i32, i32, i32) {
    %c0_i32 = arith.constant 0 : i32
    %c0_i32_0 = arith.constant 0 : i32
    %c0_i32_1 = arith.constant 0 : i32
    return %arg0, %c0_i32, %c0_i32_0 : i32, i32, i32
  }
}

</mosaic_0001>

<bundles_post_ra>
// kernel: tpu_custom_call.1
= control target key start
LH: loop header
LB: loop body
LE: loop exit
PB: predicated region body
PF: predicated region fallthrough
CT: control target
= control target key end

     0   :  { %8 = vsyncpa [#allocation4], 0  ;;  %s2030_s0 = inlined_call_operand.hbm [shape: f32[8,8,384], index: 0, kind: input, shape index: {}]   ;;  %s2031_s1 = inlined_call_operand.hbm [shape: bf16[128,384], index: 1, kind: input, shape index: {}]   ;;  %s2032_s2 = inlined_call_operand.vmem [shape: f32[1,128], index: 2, kind: input, shape index: {}]   ;;  %s2033_s3 = inlined_call_operand.hbm [shape: f32[8,8,128], index: 3, kind: output, shape index: {}]  }
   0x1   :  { %9 = vsyncpa [#allocation7], 0 }
   0x2   :  { %10 = vsyncpa [#allocation5], 0  ;;  %s1590_s12 = smov [#allocation3]   ;;  %s1518_s16 = scalar_lea.hbm %s2030_s0, 3072 }
   0x3   :  { %s16_s13 = sshll.u32 %s1590_s12, 4  ;;  %p1519_p0 = scmp.ne.s32.totalorder %s2030_s0, %s1518_s16  ;;  %s17_s13 = int_to_ptr.vmem [resolvable:$true] %s16_s13 }
   0x4   :  { %p1522_p1 = scmp.lt.u32.totalorder %s1518_s16, %s2030_s0 }
   0x6   :  { %p1524_p2 = pnand %p1522_p1, %p1519_p0 }
   0x8   :  { %1527 = shalt.err (!%p1524_p2)
}
   0x9   :  { %s1528_s21 = scalar_lea.vmem %s17_s13, 3072  ;;  %p1533_p4 = scmp.lt.s32.totalorder %s17_s13, %s17_s13 }
   0xa   :  { %p1529_p3 = scmp.ne.s32.totalorder %s17_s13, %s1528_s21  ;;  %p1534_p5 = scmp.lt.s32.totalorder %s1528_s21, %s1528_s21 }
   0xc   :  { %p1535_p6 = por %p1534_p5, %p1533_p4 }
   0xe   :  { %p1536_p7 = pnand %p1535_p6, %p1529_p3 }
  0x10   :  { %1539 = shalt.err (!%p1536_p7)
}
  0x11   :  { %s1591_s22 = smov 384   ;;  %s1592_s23 = smov 24  }
  0x12   :  { %22 = dma.hbm_to_vmem [thread:$0]  %s2030_s0, 3072, %s17_s13, [#allocation4], %s1591_s22, %s1591_s22, %s1592_s23  }
  0x13   :  { %s1593_s26 = smov [#allocation6]   ;;  %s1540_s30 = scalar_lea.hbm %s2031_s1, 3072 }
  0x14   :  { %s28_s27 = sshll.u32 %s1593_s26, 4  ;;  %p1541_p8 = scmp.ne.s32.totalorder %s2031_s1, %s1540_s30  ;;  %s29_s27 = int_to_ptr.vmem [resolvable:$true] %s28_s27 }
  0x15   :  { %p1544_p9 = scmp.lt.u32.totalorder %s1540_s30, %s2031_s1 }
  0x17   :  { %p1546_p10 = pnand %p1544_p9, %p1541_p8 }
  0x19   :  { %1549 = shalt.err (!%p1546_p10)
}
  0x1a   :  { %s1550_s8 = scalar_lea.vmem %s29_s27, 3072  ;;  %p1555_p12 = scmp.lt.s32.totalorder %s29_s27, %s29_s27 }
  0x1b   :  { %p1551_p11 = scmp.ne.s32.totalorder %s29_s27, %s1550_s8  ;;  %p1556_p13 = scmp.lt.s32.totalorder %s1550_s8, %s1550_s8 }
  0x1d   :  { %p1557_p0 = por %p1556_p13, %p1555_p12 }
  0x1f   :  { %p1558_p1 = pnand %p1557_p0, %p1551_p11 }
  0x21   :  { %1561 = shalt.err (!%p1558_p1)
}
  0x22   :  { %s1594_s0 = smov 192   ;;  %s1595_s9 = smov 12  }
  0x23   :  { %34 = dma.hbm_to_vmem [thread:$0]  %s2031_s1, 3072, %s29_s27, [#allocation7], %s1594_s0, %s1594_s0, %s1595_s9  }
  0x24   :  { %1584 = dma.done.wait [#allocation4], 3072  }
  0x25   :  { %1585 = vsyncadd [#allocation4], 4294964224 }
  0x26   :  { %1586 = dma.done.wait [#allocation7], 3072  }
  0x27   :  { %1587 = vsyncadd [#allocation7], 4294964224  ;;  %v1596_v0 = vmov 0.0   ;;  %v1597_v1 = vmov 0   ;;  %vm1598_vm0 = vmmov 0   ;;  %v1599_v25 = vmov 0.0|0.0  }
  0x28   :  { %1227 = vmatprep.subr.bf16.mxu1 %v1596_v0  ;;  %247 = vmatprep.mubr.bf16.mxu0 %v1597_v1  ;;  %v1651_v2 = vld [vmem:[#allocation6 + $0x4] ss:$12 sps:$4 sm:$0xff]   ;;  %v1653_v3 = vld [vmem:[#allocation6] ss:$12 sps:$4 sm:$0xff]   ;;  %v1656_v4 = vld [vmem:[#allocation6 + $0x1c] ss:$12 sps:$4 sm:$0xff]  }
  0x29   :  { %1243 = vmatprep.mubr.msk.bf16.mxu1 %vm1598_vm0, %v1596_v0  ;;  %215 = vmatprep.subr.bf16.mxu0 %v1651_v2  ;;  %v1659_v5 = vld [vmem:[#allocation6 + $0x18] ss:$12 sps:$4 sm:$0xff]   ;;  %v1662_v6 = vld [vmem:[#allocation6 + $0x34] ss:$12 sps:$4 sm:$0xff]   ;;  %v1665_v7 = vld [vmem:[#allocation6 + $0x30] ss:$12 sps:$4 sm:$0xff]  }
  0x2a   :  { %216 = vmatpush1.bf16.msra.mxu0 %v1653_v3  ;;  %v1668_v8 = vld [vmem:[#allocation6 + $0x4c] ss:$12 sps:$4 sm:$0xff]   ;;  %v1670_v9 = vld [vmem:[#allocation6 + $0x8] ss:$12 sps:$4 sm:$0xff]   ;;  %v1677_v11 = vld [vmem:[#allocation6 + $0x64] ss:$12 sps:$4 sm:$0xff]  }
  0x2b   :  { %217 = vmatprep.subr.bf16.mxu0 %v1656_v4  ;;  %v1673_v10 = vld [vmem:[#allocation6 + $0x48] ss:$12 sps:$4 sm:$0xff]   ;;  %1228 = vmatpush3.bf16.msra.mxu1 %v1670_v9  ;;  %v1680_v12 = vld [vmem:[#allocation6 + $0x20] ss:$12 sps:$4 sm:$0xff]   ;;  %v1686_v14 = vld [vmem:[#allocation6 + $0x38] ss:$12 sps:$4 sm:$0xff]  }
  0x2c   :  { %1229 = vmatprep.subr.bf16.mxu1 %v1596_v0  ;;  %v1682_v13 = vld [vmem:[#allocation6 + $0x60] ss:$12 sps:$4 sm:$0xff]   ;;  %v1689_v15 = vld [vmem:[#allocation6 + $0x7c] ss:$12 sps:$4 sm:$0xff]   ;;  %v1693_v16 = vld [vmem:[#allocation6 + $0x78] ss:$12 sps:$4 sm:$0xff]  }
  0x2d   :  { %v1696_v17 = vld [vmem:[#allocation6 + $0x50] ss:$12 sps:$4 sm:$0xff]   ;;  %v1699_v18 = vld [vmem:[#allocation6 + $0x94] ss:$12 sps:$4 sm:$0xff]   ;;  %v1709_v21 = vld [vmem:[#allocation6 + $0xac] ss:$12 sps:$4 sm:$0xff]  }
  0x2e   :  { %218 = vmatpush1.bf16.msra.mxu0 %v1659_v5  ;;  %v1703_v19 = vld [vmem:[#allocation6 + $0x90] ss:$12 sps:$4 sm:$0xff]   ;;  %v1706_v20 = vld [vmem:[#allocation6 + $0x68] ss:$12 sps:$4 sm:$0xff]   ;;  %v1716_v23 = vld [vmem:[#allocation6 + $0x80] ss:$12 sps:$4 sm:$0xff]  }
  0x2f   :  { %219 = vmatprep.subr.bf16.mxu0 %v1662_v6  ;;  %1230 = vmatpush3.bf16.msra.mxu1 %v1680_v12  ;;  %v1713_v22 = vld [vmem:[#allocation6 + $0xa8] ss:$12 sps:$4 sm:$0xff]   ;;  %v1722_v24 = vld [vmem:[#allocation6 + $0x98] ss:$12 sps:$4 sm:$0xff]   ;;  %v1727_v26 = vld [vmem:[#allocation6 + $0xb0] ss:$12 sps:$4 sm:$0xff]  }
  0x30   :  { %1231 = vmatprep.subr.bf16.mxu1 %v1596_v0  ;;  %v83_v27 = vld [vmem:[#allocation3] sm:$0xff]  ;;  %v84_v30 = vld [vmem:[#allocation3 + $0x8] sm:$0xff]  ;;  %v85_v48 = vld [vmem:[#allocation3 + $0x10] sm:$0xff] }
  0x31   :  { %v1770_v44 = vld [vmem:[%s2032_s2] ss:$0 sm:$0xff]  ;;  %v326_v58 = vld [vmem:[#allocation3 + $0x18] sm:$0xff]  ;;  %s1600_s2 = smov [#allocation8]  }
  0x32   :  { %220 = vmatpush1.bf16.msra.mxu0 %v1665_v7  ;;  %v327_v62 = vld [vmem:[#allocation3 + $0x20] sm:$0xff]  ;;  %s1101_s13 = sshll.u32 %s1600_s2, 4  ;;  %s1102_s13 = int_to_ptr.vmem [resolvable:$true] %s1101_s13 }
  0x33   :  { %221 = vmatprep.subr.bf16.mxu0 %v1668_v8  ;;  %1232 = vmatpush3.bf16.msra.mxu1 %v1686_v14  ;;  %s1562_s14 = scalar_lea.vmem %s1102_s13, 1024  ;;  %p1567_p3 = scmp.lt.s32.totalorder %s1102_s13, %s1102_s13 }
  0x34   :  { %1233 = vmatprep.subr.bf16.mxu1 %v1596_v0  ;;  %p1563_p2 = scmp.ne.s32.totalorder %s1102_s13, %s1562_s14  ;;  %p1568_p4 = scmp.lt.s32.totalorder %s1562_s14, %s1562_s14 }
  0x36   :  { %222 = vmatpush1.bf16.msra.mxu0 %v1673_v10  ;;  %p1569_p5 = por %p1568_p4, %p1567_p3 }
  0x37   :  { %223 = vmatprep.subr.bf16.mxu0 %v1677_v11  ;;  %1234 = vmatpush3.bf16.msra.mxu1 %v1696_v17 }
  0x38   :  { %1235 = vmatprep.subr.bf16.mxu1 %v1596_v0  ;;  %p1570_p6 = pnand %p1569_p5, %p1563_p2 }
  0x3a   :  { %224 = vmatpush1.bf16.msra.mxu0 %v1682_v13 }
  0x3b   :  { %225 = vmatprep.subr.bf16.mxu0 %v1689_v15  ;;  %1236 = vmatpush3.bf16.msra.mxu1 %v1706_v20 }
  0x3c   :  { %1237 = vmatprep.subr.bf16.mxu1 %v1596_v0 }
  0x3e   :  { %226 = vmatpush1.bf16.msra.mxu0 %v1693_v16 }
  0x3f   :  { %227 = vmatprep.subr.bf16.mxu0 %v1699_v18  ;;  %1238 = vmatpush3.bf16.msra.mxu1 %v1716_v23 }
  0x40   :  { %1239 = vmatprep.subr.bf16.mxu1 %v1596_v0 }
  0x42   :  { %228 = vmatpush1.bf16.msra.mxu0 %v1703_v19 }
  0x43   :  { %229 = vmatprep.subr.bf16.mxu0 %v1709_v21  ;;  %1240 = vmatpush3.bf16.msra.mxu1 %v1722_v24 }
  0x44   :  { %1241 = vmatprep.subr.bf16.mxu1 %v1596_v0 }
  0x46   :  { %230 = vmatpush1.bf16.msra.mxu0 %v1713_v22 }
  0x47   :  { %330 = vmatprep.subr.bf16.mxu0 %v1651_v2  ;;  %1242 = vmatpush3.bf16.msra.mxu1 %v1727_v26 }
  0x48   :  { %1247 = vmatprep.subr.bf16.mxu1 %v1596_v0 }
  0x49   :  { %248 = vmatmul.mubr.bf16.vlgmr.msra.gmra.mrb[0].mxu0 %v1599_v25 }
  0x4a   :  { %331 = vmatpush1.bf16.msra.mxu0 %v1653_v3  ;;  %362 = vmatprep.mubr.bf16.mxu0 %v1597_v1 }
  0x4b   :  { %332 = vmatprep.subr.bf16.mxu0 %v1656_v4  ;;  %1244 = vmatmul.mubr.bf16.vlgmr.msra.gmra.mrb[0].mxu1 %v1599_v25 }
  0x4c   :  { %1248 = vmatpush3.bf16.msra.mxu1 %v1670_v9  ;;  %1263 = vmatprep.mubr.msk.bf16.mxu1 %vm1598_vm0, %v1596_v0 }
  0x4d   :  { %1249 = vmatprep.subr.bf16.mxu1 %v1596_v0 }
  0x4e   :  { %333 = vmatpush1.bf16.msra.mxu0 %v1659_v5 }
  0x4f   :  { %334 = vmatprep.subr.bf16.mxu0 %v1662_v6 }
  0x50   :  { %1250 = vmatpush3.bf16.msra.mxu1 %v1680_v12 }
  0x51   :  { %1251 = vmatprep.subr.bf16.mxu1 %v1596_v0 }
  0x52   :  { %335 = vmatpush1.bf16.msra.mxu0 %v1665_v7 }
  0x53   :  { %336 = vmatprep.subr.bf16.mxu0 %v1668_v8 }
  0x54   :  { %1252 = vmatpush3.bf16.msra.mxu1 %v1686_v14 }
  0x55   :  { %1253 = vmatprep.subr.bf16.mxu1 %v1596_v0 }
  0x56   :  { %337 = vmatpush1.bf16.msra.mxu0 %v1673_v10 }
  0x57   :  { %338 = vmatprep.subr.bf16.mxu0 %v1677_v11 }
  0x58   :  { %1254 = vmatpush3.bf16.msra.mxu1 %v1696_v17 }
  0x59   :  { %1255 = vmatprep.subr.bf16.mxu1 %v1596_v0 }
  0x5a   :  { %339 = vmatpush1.bf16.msra.mxu0 %v1682_v13 }
  0x5b   :  { %340 = vmatprep.subr.bf16.mxu0 %v1689_v15 }
  0x5c   :  { %1256 = vmatpush3.bf16.msra.mxu1 %v1706_v20 }
  0x5d   :  { %1257 = vmatprep.subr.bf16.mxu1 %v1596_v0 }
  0x5e   :  { %341 = vmatpush1.bf16.msra.mxu0 %v1693_v16 }
  0x5f   :  { %342 = vmatprep.subr.bf16.mxu0 %v1699_v18 }
  0x60   :  { %1258 = vmatpush3.bf16.msra.mxu1 %v1716_v23 }
  0x61   :  { %1259 = vmatprep.subr.bf16.mxu1 %v1596_v0 }
  0x62   :  { %343 = vmatpush1.bf16.msra.mxu0 %v1703_v19 }
  0x63   :  { %344 = vmatprep.subr.bf16.mxu0 %v1709_v21 }
  0x64   :  { %1260 = vmatpush3.bf16.msra.mxu1 %v1722_v24 }
  0x65   :  { %1261 = vmatprep.subr.bf16.mxu1 %v1596_v0 }
  0x66   :  { %345 = vmatpush1.bf16.msra.mxu0 %v1713_v22 }
  0x67   :  { %440 = vmatprep.subr.bf16.mxu0 %v1651_v2 }
  0x68   :  { %1262 = vmatpush3.bf16.msra.mxu1 %v1727_v26 }
  0x69   :  { %1267 = vmatprep.subr.bf16.mxu1 %v1596_v0 }
 0x11c   :  { %v249_v28 = vpop.f32.mrb[0].mxu0 }
 0x11d   :  { %v296_v29 = vadd.f32 %v249_v28, %v83_v27  ;;  %v251_v31 = vpop.f32.mrb[1].mxu0 }
 0x11e   :  { %v253_v32 = vpop.f32.mrb[2].mxu0  ;;  %v303_v35 = vadd.f32 %v251_v31, %v84_v30  ;;  %v290_v37 = vpop.f32.mrb[0].mxu1 }
 0x11f   :  { %v1138_v33 = vmul.f32 -1.442695, %v296_v29  ;;  %v254_v34 = vpop.f32.mrb[3].mxu0  ;;  %v1245_v38 = vpop.f32.mrb[1].mxu1  ;;  %v316_v46 = vadd.f32 %v1770_v44, %v290_v37 }
 0x120   :  { %v1139_v36 = vmul.f32 -1.442695, %v303_v35  ;;  %v293_v39 = vpop.f32.mrb[2].mxu1 }
 0x121   :  { %1432 = vpow2.f32 %v1138_v33  ;;  %v1246_v40 = vpop.f32.mrb[3].mxu1 }
 0x122   :  { %1434 = vpow2.f32 %v1139_v36  ;;  %v328_v40 = vld [vmem:[#allocation3 + $0x28] sm:$0xff] }
 0x12b   :  { %v1433_v41 = vpop.eup %1432 }
 0x12c   :  { %v300_v42 = vadd.f32 1.0, %v1433_v41  ;;  %v1435_v43 = vpop.eup %1434 }
 0x12d   :  { %v307_v45 = vadd.f32 1.0, %v1435_v43 }
 0x12e   :  { %1436 = vrcp.f32 %v300_v42 }
 0x12f   :  { %1438 = vrcp.f32 %v307_v45 }
 0x138   :  { %v1437_v47 = vpop.eup %1436 }
 0x139   :  { %v317_v49 = vmul.f32 %v1437_v47, %v316_v46  ;;  %v1439_v51 = vpop.eup %1438 }
 0x13a   :  { %v320_v52 = vsub.f32 1.0, %v1439_v51  ;;  %v322_v55 = vmul.f32 0.0, %v1439_v51  ;;  %v436_v51 = vld [vmem:[#allocation3 + $0x30] sm:$0xff] }
 0x13b   :  { %v318_v50 = vadd.f32 %v317_v49, %v85_v48 }
 0x13d   :  { %1440 = vtanh.f32 %v318_v50 }
 0x147   :  { %v1441_v53 = vpop.eup %1440 }
 0x148   :  { %v321_v54 = vmul.f32 %v1441_v53, %v320_v52 }
 0x14a   :  { %v1773_v56 = vadd.f32 %v322_v55, %v321_v54  ;;  %v437_v55 = vld [vmem:[#allocation3 + $0x38] sm:$0xff] }
 0x14c   :  { %324 = vst [vmem:[#allocation8] sm:$0xff] %v1773_v56  ;;  %v329_v57 = vpack.c.bf16 %v1773_v56, %v1773_v56 }
 0x14e   :  { %363 = vmatmul.mubr.bf16.vlgmr.msra.gmra.mrb[4].mxu0 %v329_v57  ;;  %1264 = vmatmul.mubr.bf16.vlgmr.msra.gmra.mrb[4].mxu1 %v329_v57 }
 0x14f   :  { %441 = vmatpush1.bf16.msra.mxu0 %v1653_v3  ;;  %1268 = vmatpush3.bf16.msra.mxu1 %v1670_v9 }
 0x150   :  { %442 = vmatprep.subr.bf16.mxu0 %v1656_v4  ;;  %1269 = vmatprep.subr.bf16.mxu1 %v1596_v0 }
 0x151   :  { %472 = vmatprep.mubr.bf16.mxu0 %v1597_v1  ;;  %1283 = vmatprep.mubr.msk.bf16.mxu1 %vm1598_vm0, %v1596_v0 }
 0x153   :  { %443 = vmatpush1.bf16.msra.mxu0 %v1659_v5  ;;  %1270 = vmatpush3.bf16.msra.mxu1 %v1680_v12 }
 0x154   :  { %444 = vmatprep.subr.bf16.mxu0 %v1662_v6  ;;  %1271 = vmatprep.subr.bf16.mxu1 %v1596_v0 }
 0x157   :  { %445 = vmatpush1.bf16.msra.mxu0 %v1665_v7  ;;  %1272 = vmatpush3.bf16.msra.mxu1 %v1686_v14 }
 0x158   :  { %446 = vmatprep.subr.bf16.mxu0 %v1668_v8  ;;  %1273 = vmatprep.subr.bf16.mxu1 %v1596_v0 }
 0x15b   :  { %447 = vmatpush1.bf16.msra.mxu0 %v1673_v10  ;;  %1274 = vmatpush3.bf16.msra.mxu1 %v1696_v17 }
 0x15c   :  { %448 = vmatprep.subr.bf16.mxu0 %v1677_v11  ;;  %1275 = vmatprep.subr.bf16.mxu1 %v1596_v0 }
 0x15f   :  { %449 = vmatpush1.bf16.msra.mxu0 %v1682_v13  ;;  %1276 = vmatpush3.bf16.msra.mxu1 %v1706_v20 }
 0x160   :  { %450 = vmatprep.subr.bf16.mxu0 %v1689_v15  ;;  %1277 = vmatprep.subr.bf16.mxu1 %v1596_v0 }
 0x163   :  { %451 = vmatpush1.bf16.msra.mxu0 %v1693_v16  ;;  %1278 = vmatpush3.bf16.msra.mxu1 %v1716_v23 }
 0x164   :  { %452 = vmatprep.subr.bf16.mxu0 %v1699_v18  ;;  %1279 = vmatprep.subr.bf16.mxu1 %v1596_v0 }
 0x167   :  { %453 = vmatpush1.bf16.msra.mxu0 %v1703_v19  ;;  %1280 = vmatpush3.bf16.msra.mxu1 %v1722_v24 }
 0x168   :  { %454 = vmatprep.subr.bf16.mxu0 %v1709_v21  ;;  %1281 = vmatprep.subr.bf16.mxu1 %v1596_v0 }
 0x16b   :  { %455 = vmatpush1.bf16.msra.mxu0 %v1713_v22  ;;  %1282 = vmatpush3.bf16.msra.mxu1 %v1727_v26 }
 0x16c   :  { %550 = vmatprep.subr.bf16.mxu0 %v1651_v2  ;;  %1287 = vmatprep.subr.bf16.mxu1 %v1596_v0 }
 0x221   :  { %v364_v59 = vpop.f32.mrb[4].mxu0  ;;  %v405_v60 = vpop.f32.mrb[4].mxu1 }
 0x222   :  { %v411_v61 = vadd.f32 %v364_v59, %v326_v58  ;;  %v366_v63 = vpop.f32.mrb[5].mxu0  ;;  %v1265_v25 = vpop.f32.mrb[5].mxu1  ;;  %v425_v38 = vadd.f32 %v1770_v44, %v405_v60 }
 0x223   :  { %v368_v27 = vpop.f32.mrb[6].mxu0  ;;  %v408_v28 = vpop.f32.mrb[6].mxu1  ;;  %v418_v32 = vadd.f32 %v366_v63, %v327_v62 }
 0x224   :  { %v1141_v29 = vmul.f32 -1.442695, %v411_v61  ;;  %v369_v30 = vpop.f32.mrb[7].mxu0  ;;  %v1266_v31 = vpop.f32.mrb[7].mxu1 }
 0x225   :  { %v1142_v33 = vmul.f32 -1.442695, %v418_v32 }
 0x226   :  { %1442 = vpow2.f32 %v1141_v29 }
 0x227   :  { %1444 = vpow2.f32 %v1142_v33  ;;  %v438_v33 = vld [vmem:[#allocation3 + $0x40] sm:$0xff] }
 0x230   :  { %v1443_v34 = vpop.eup %1442 }
 0x231   :  { %v415_v35 = vadd.f32 1.0, %v1443_v34  ;;  %v1445_v36 = vpop.eup %1444 }
 0x232   :  { %v422_v37 = vadd.f32 1.0, %v1445_v36 }
 0x233   :  { %1446 = vrcp.f32 %v415_v35 }
 0x234   :  { %1448 = vrcp.f32 %v422_v37 }
 0x23d   :  { %v1447_v39 = vpop.eup %1446 }
 0x23e   :  { %v426_v41 = vmul.f32 %v1447_v39, %v425_v38  ;;  %v1449_v43 = vpop.eup %1448 }
 0x23f   :  { %v429_v45 = vsub.f32 1.0, %v1449_v43  ;;  %v431_v48 = vmul.f32 %v1449_v43, %v1773_v56  ;;  %v546_v43 = vld [vmem:[#allocation3 + $0x48] sm:$0xff] }
 0x240   :  { %v427_v42 = vadd.f32 %v426_v41, %v328_v40 }
 0x242   :  { %1450 = vtanh.f32 %v427_v42 }
 0x24c   :  { %v1451_v46 = vpop.eup %1450 }
 0x24d   :  { %v430_v47 = vmul.f32 %v1451_v46, %v429_v45 }
 0x24f   :  { %v1815_v49 = vadd.f32 %v431_v48, %v430_v47  ;;  %v547_v48 = vld [vmem:[#allocation3 + $0x50] sm:$0xff] }
 0x251   :  { %434 = vst [vmem:[#allocation8 + $0x8] sm:$0xff] %v1815_v49  ;;  %v439_v50 = vpack.c.bf16 %v1815_v49, %v1815_v49 }
 0x253   :  { %473 = vmatmul.mubr.bf16.vlgmr.msra.gmra.mrb[8].mxu0 %v439_v50  ;;  %1284 = vmatmul.mubr.bf16.vlgmr.msra.gmra.mrb[8].mxu1 %v439_v50 }
 0x254   :  { %551 = vmatpush1.bf16.msra.mxu0 %v1653_v3  ;;  %1288 = vmatpush3.bf16.msra.mxu1 %v1670_v9 }
 0x255   :  { %552 = vmatprep.subr.bf16.mxu0 %v1656_v4  ;;  %1289 = vmatprep.subr.bf16.mxu1 %v1596_v0 }
 0x256   :  { %582 = vmatprep.mubr.bf16.mxu0 %v1597_v1  ;;  %1303 = vmatprep.mubr.msk.bf16.mxu1 %vm1598_vm0, %v1596_v0 }
 0x258   :  { %553 = vmatpush1.bf16.msra.mxu0 %v1659_v5  ;;  %1290 = vmatpush3.bf16.msra.mxu1 %v1680_v12 }
 0x259   :  { %554 = vmatprep.subr.bf16.mxu0 %v1662_v6  ;;  %1291 = vmatprep.subr.bf16.mxu1 %v1596_v0 }
 0x25c   :  { %555 = vmatpush1.bf16.msra.mxu0 %v1665_v7  ;;  %1292 = vmatpush3.bf16.msra.mxu1 %v1686_v14 }
 0x25d   :  { %556 = vmatprep.subr.bf16.mxu0 %v1668_v8  ;;  %1293 = vmatprep.subr.bf16.mxu1 %v1596_v0 }
 0x260   :  { %557 = vmatpush1.bf16.msra.mxu0 %v1673_v10  ;;  %1294 = vmatpush3.bf16.msra.mxu1 %v1696_v17 }
 0x261   :  { %558 = vmatprep.subr.bf16.mxu0 %v1677_v11  ;;  %1295 = vmatprep.subr.bf16.mxu1 %v1596_v0 }
 0x264   :  { %559 = vmatpush1.bf16.msra.mxu0 %v1682_v13  ;;  %1296 = vmatpush3.bf16.msra.mxu1 %v1706_v20 }
 0x265   :  { %560 = vmatprep.subr.bf16.mxu0 %v1689_v15  ;;  %1297 = vmatprep.subr.bf16.mxu1 %v1596_v0 }
 0x268   :  { %561 = vmatpush1.bf16.msra.mxu0 %v1693_v16  ;;  %1298 = vmatpush3.bf16.msra.mxu1 %v1716_v23 }
 0x269   :  { %562 = vmatprep.subr.bf16.mxu0 %v1699_v18  ;;  %1299 = vmatprep.subr.bf16.mxu1 %v1596_v0 }
 0x26c   :  { %563 = vmatpush1.bf16.msra.mxu0 %v1703_v19  ;;  %1300 = vmatpush3.bf16.msra.mxu1 %v1722_v24 }
 0x26d   :  { %564 = vmatprep.subr.bf16.mxu0 %v1709_v21  ;;  %1301 = vmatprep.subr.bf16.mxu1 %v1596_v0 }
 0x270   :  { %565 = vmatpush1.bf16.msra.mxu0 %v1713_v22  ;;  %1302 = vmatpush3.bf16.msra.mxu1 %v1727_v26 }
 0x271   :  { %660 = vmatprep.subr.bf16.mxu0 %v1651_v2  ;;  %1307 = vmatprep.subr.bf16.mxu1 %v1596_v0 }
 0x326   :  { %v474_v52 = vpop.f32.mrb[8].mxu0  ;;  %v515_v53 = vpop.f32.mrb[8].mxu1 }
 0x327   :  { %v521_v54 = vadd.f32 %v474_v52, %v436_v51  ;;  %v476_v56 = vpop.f32.mrb[9].mxu0  ;;  %v1285_v57 = vpop.f32.mrb[9].mxu1  ;;  %v535_v31 = vadd.f32 %v1770_v44, %v515_v53 }
 0x328   :  { %v478_v58 = vpop.f32.mrb[10].mxu0  ;;  %v518_v59 = vpop.f32.mrb[10].mxu1  ;;  %v528_v63 = vadd.f32 %v476_v56, %v437_v55 }
 0x329   :  { %v1143_v60 = vmul.f32 -1.442695, %v521_v54  ;;  %v479_v61 = vpop.f32.mrb[11].mxu0  ;;  %v1286_v62 = vpop.f32.mrb[11].mxu1 }
 0x32a   :  { %v1144_v25 = vmul.f32 -1.442695, %v528_v63 }
 0x32b   :  { %1452 = vpow2.f32 %v1143_v60 }
 0x32c   :  { %1454 = vpow2.f32 %v1144_v25  ;;  %v548_v25 = vld [vmem:[#allocation3 + $0x58] sm:$0xff] }
 0x335   :  { %v1453_v27 = vpop.eup %1452 }
 0x336   :  { %v525_v28 = vadd.f32 1.0, %v1453_v27  ;;  %v1455_v29 = vpop.eup %1454 }
 0x337   :  { %v532_v30 = vadd.f32 1.0, %v1455_v29 }
 0x338   :  { %1456 = vrcp.f32 %v525_v28 }
 0x339   :  { %1458 = vrcp.f32 %v532_v30 }
 0x342   :  { %v1457_v32 = vpop.eup %1456 }
 0x343   :  { %v536_v34 = vmul.f32 %v1457_v32, %v535_v31  ;;  %v1459_v36 = vpop.eup %1458 }
 0x344   :  { %v539_v37 = vsub.f32 1.0, %v1459_v36  ;;  %v541_v40 = vmul.f32 %v1459_v36, %v1815_v49  ;;  %v656_v36 = vld [vmem:[#allocation3 + $0x60] sm:$0xff] }
 0x345   :  { %v537_v35 = vadd.f32 %v536_v34, %v438_v33 }
 0x347   :  { %1460 = vtanh.f32 %v537_v35 }
 0x351   :  { %v1461_v38 = vpop.eup %1460 }
 0x352   :  { %v540_v39 = vmul.f32 %v1461_v38, %v539_v37 }
 0x354   :  { %v1857_v41 = vadd.f32 %v541_v40, %v540_v39  ;;  %v657_v40 = vld [vmem:[#allocation3 + $0x68] sm:$0xff] }
 0x356   :  { %544 = vst [vmem:[#allocation8 + $0x10] sm:$0xff] %v1857_v41  ;;  %v549_v42 = vpack.c.bf16 %v1857_v41, %v1857_v41 }
 0x358   :  { %583 = vmatmul.mubr.bf16.vlgmr.msra.gmra.mrb[12].mxu0 %v549_v42  ;;  %1304 = vmatmul.mubr.bf16.vlgmr.msra.gmra.mrb[12].mxu1 %v549_v42 }
 0x359   :  { %661 = vmatpush1.bf16.msra.mxu0 %v1653_v3  ;;  %1308 = vmatpush3.bf16.msra.mxu1 %v1670_v9 }
 0x35a   :  { %662 = vmatprep.subr.bf16.mxu0 %v1656_v4  ;;  %1309 = vmatprep.subr.bf16.mxu1 %v1596_v0 }
 0x35b   :  { %692 = vmatprep.mubr.bf16.mxu0 %v1597_v1  ;;  %1323 = vmatprep.mubr.msk.bf16.mxu1 %vm1598_vm0, %v1596_v0 }
 0x35d   :  { %663 = vmatpush1.bf16.msra.mxu0 %v1659_v5  ;;  %1310 = vmatpush3.bf16.msra.mxu1 %v1680_v12 }
 0x35e   :  { %664 = vmatprep.subr.bf16.mxu0 %v1662_v6  ;;  %1311 = vmatprep.subr.bf16.mxu1 %v1596_v0 }
 0x361   :  { %665 = vmatpush1.bf16.msra.mxu0 %v1665_v7  ;;  %1312 = vmatpush3.bf16.msra.mxu1 %v1686_v14 }
 0x362   :  { %666 = vmatprep.subr.bf16.mxu0 %v1668_v8  ;;  %1313 = vmatprep.subr.bf16.mxu1 %v1596_v0 }
 0x365   :  { %667 = vmatpush1.bf16.msra.mxu0 %v1673_v10  ;;  %1314 = vmatpush3.bf16.msra.mxu1 %v1696_v17 }
 0x366   :  { %668 = vmatprep.subr.bf16.mxu0 %v1677_v11  ;;  %1315 = vmatprep.subr.bf16.mxu1 %v1596_v0 }
 0x369   :  { %669 = vmatpush1.bf16.msra.mxu0 %v1682_v13  ;;  %1316 = vmatpush3.bf16.msra.mxu1 %v1706_v20 }
 0x36a   :  { %670 = vmatprep.subr.bf16.mxu0 %v1689_v15  ;;  %1317 = vmatprep.subr.bf16.mxu1 %v1596_v0 }
 0x36d   :  { %671 = vmatpush1.bf16.msra.mxu0 %v1693_v16  ;;  %1318 = vmatpush3.bf16.msra.mxu1 %v1716_v23 }
 0x36e   :  { %672 = vmatprep.subr.bf16.mxu0 %v1699_v18  ;;  %1319 = vmatprep.subr.bf16.mxu1 %v1596_v0 }
 0x371   :  { %673 = vmatpush1.bf16.msra.mxu0 %v1703_v19  ;;  %1320 = vmatpush3.bf16.msra.mxu1 %v1722_v24 }
 0x372   :  { %674 = vmatprep.subr.bf16.mxu0 %v1709_v21  ;;  %1321 = vmatprep.subr.bf16.mxu1 %v1596_v0 }
 0x375   :  { %675 = vmatpush1.bf16.msra.mxu0 %v1713_v22  ;;  %1322 = vmatpush3.bf16.msra.mxu1 %v1727_v26 }
 0x376   :  { %770 = vmatprep.subr.bf16.mxu0 %v1651_v2  ;;  %1327 = vmatprep.subr.bf16.mxu1 %v1596_v0 }
 0x42b   :  { %v584_v45 = vpop.f32.mrb[12].mxu0  ;;  %v625_v46 = vpop.f32.mrb[12].mxu1 }
 0x42c   :  { %v631_v47 = vadd.f32 %v584_v45, %v546_v43  ;;  %v586_v49 = vpop.f32.mrb[13].mxu0  ;;  %v1305_v50 = vpop.f32.mrb[13].mxu1  ;;  %v645_v62 = vadd.f32 %v1770_v44, %v625_v46 }
 0x42d   :  { %v588_v51 = vpop.f32.mrb[14].mxu0  ;;  %v628_v52 = vpop.f32.mrb[14].mxu1  ;;  %v638_v56 = vadd.f32 %v586_v49, %v547_v48 }
 0x42e   :  { %v1145_v53 = vmul.f32 -1.442695, %v631_v47  ;;  %v589_v54 = vpop.f32.mrb[15].mxu0  ;;  %v1306_v55 = vpop.f32.mrb[15].mxu1 }
 0x42f   :  { %v1146_v57 = vmul.f32 -1.442695, %v638_v56 }
 0x430   :  { %1462 = vpow2.f32 %v1145_v53 }
 0x431   :  { %1464 = vpow2.f32 %v1146_v57  ;;  %v658_v57 = vld [vmem:[#allocation3 + $0x70] sm:$0xff] }
 0x43a   :  { %v1463_v58 = vpop.eup %1462 }
 0x43b   :  { %v635_v59 = vadd.f32 1.0, %v1463_v58  ;;  %v1465_v60 = vpop.eup %1464 }
 0x43c   :  { %v642_v61 = vadd.f32 1.0, %v1465_v60 }
 0x43d   :  { %1466 = vrcp.f32 %v635_v59 }
 0x43e   :  { %1468 = vrcp.f32 %v642_v61 }
 0x447   :  { %v1467_v63 = vpop.eup %1466 }
 0x448   :  { %v646_v27 = vmul.f32 %v1467_v63, %v645_v62  ;;  %v1469_v29 = vpop.eup %1468 }
 0x449   :  { %v649_v30 = vsub.f32 1.0, %v1469_v29  ;;  %v651_v33 = vmul.f32 %v1469_v29, %v1857_v41 }
 0x44a   :  { %v647_v28 = vadd.f32 %v646_v27, %v548_v25 }
 0x44c   :  { %1470 = vtanh.f32 %v647_v28 }
 0x456   :  { %v1471_v31 = vpop.eup %1470 }
 0x457   :  { %v650_v32 = vmul.f32 %v1471_v31, %v649_v30 }
 0x459   :  { %v1899_v34 = vadd.f32 %v651_v33, %v650_v32 }
 0x45b   :  { %654 = vst [vmem:[#allocation8 + $0x18] sm:$0xff] %v1899_v34  ;;  %v659_v35 = vpack.c.bf16 %v1899_v34, %v1899_v34 }
 0x45d   :  { %693 = vmatmul.mubr.bf16.vlgmr.msra.gmra.mrb[16].mxu0 %v659_v35  ;;  %1324 = vmatmul.mubr.bf16.vlgmr.msra.gmra.mrb[16].mxu1 %v659_v35 }
 0x45e   :  { %771 = vmatpush1.bf16.msra.mxu0 %v1653_v3  ;;  %1328 = vmatpush3.bf16.msra.mxu1 %v1670_v9 }
 0x45f   :  { %772 = vmatprep.subr.bf16.mxu0 %v1656_v4  ;;  %1329 = vmatprep.subr.bf16.mxu1 %v1596_v0 }
 0x460   :  { %802 = vmatprep.mubr.bf16.mxu0 %v1597_v1  ;;  %1343 = vmatprep.mubr.msk.bf16.mxu1 %vm1598_vm0, %v1596_v0 }
 0x462   :  { %773 = vmatpush1.bf16.msra.mxu0 %v1659_v5  ;;  %1330 = vmatpush3.bf16.msra.mxu1 %v1680_v12 }
 0x463   :  { %774 = vmatprep.subr.bf16.mxu0 %v1662_v6  ;;  %1331 = vmatprep.subr.bf16.mxu1 %v1596_v0 }
 0x466   :  { %775 = vmatpush1.bf16.msra.mxu0 %v1665_v7  ;;  %1332 = vmatpush3.bf16.msra.mxu1 %v1686_v14 }
 0x467   :  { %776 = vmatprep.subr.bf16.mxu0 %v1668_v8  ;;  %1333 = vmatprep.subr.bf16.mxu1 %v1596_v0 }
 0x46a   :  { %777 = vmatpush1.bf16.msra.mxu0 %v1673_v10  ;;  %1334 = vmatpush3.bf16.msra.mxu1 %v1696_v17 }
 0x46b   :  { %778 = vmatprep.subr.bf16.mxu0 %v1677_v11  ;;  %1335 = vmatprep.subr.bf16.mxu1 %v1596_v0 }
 0x46e   :  { %779 = vmatpush1.bf16.msra.mxu0 %v1682_v13  ;;  %1336 = vmatpush3.bf16.msra.mxu1 %v1706_v20 }
 0x46f   :  { %780 = vmatprep.subr.bf16.mxu0 %v1689_v15  ;;  %1337 = vmatprep.subr.bf16.mxu1 %v1596_v0 }
 0x472   :  { %781 = vmatpush1.bf16.msra.mxu0 %v1693_v16  ;;  %1338 = vmatpush3.bf16.msra.mxu1 %v1716_v23 }
 0x473   :  { %782 = vmatprep.subr.bf16.mxu0 %v1699_v18  ;;  %1339 = vmatprep.subr.bf16.mxu1 %v1596_v0 }
 0x476   :  { %783 = vmatpush1.bf16.msra.mxu0 %v1703_v19  ;;  %1340 = vmatpush3.bf16.msra.mxu1 %v1722_v24 }
 0x477   :  { %784 = vmatprep.subr.bf16.mxu0 %v1709_v21  ;;  %1341 = vmatprep.subr.bf16.mxu1 %v1596_v0 }
 0x47a   :  { %785 = vmatpush1.bf16.msra.mxu0 %v1713_v22  ;;  %1342 = vmatpush3.bf16.msra.mxu1 %v1727_v26 }
 0x47b   :  { %880 = vmatprep.subr.bf16.mxu0 %v1651_v2  ;;  %1347 = vmatprep.subr.bf16.mxu1 %v1596_v0 }
 0x530   :  { %v694_v37 = vpop.f32.mrb[16].mxu0  ;;  %v735_v38 = vpop.f32.mrb[16].mxu1 }
 0x531   :  { %v741_v39 = vadd.f32 %v694_v37, %v656_v36  ;;  %v696_v41 = vpop.f32.mrb[17].mxu0  ;;  %v1325_v42 = vpop.f32.mrb[17].mxu1  ;;  %v755_v55 = vadd.f32 %v1770_v44, %v735_v38 }
 0x532   :  { %v698_v43 = vpop.f32.mrb[18].mxu0  ;;  %v738_v45 = vpop.f32.mrb[18].mxu1  ;;  %v748_v49 = vadd.f32 %v696_v41, %v657_v40  ;;  %v768_v42 = vld [vmem:[#allocation3 + $0x88] sm:$0xff] }
 0x533   :  { %v1147_v46 = vmul.f32 -1.442695, %v741_v39  ;;  %v699_v47 = vpop.f32.mrb[19].mxu0  ;;  %v1326_v48 = vpop.f32.mrb[19].mxu1 }
 0x534   :  { %v1148_v50 = vmul.f32 -1.442695, %v748_v49 }
 0x535   :  { %1472 = vpow2.f32 %v1147_v46 }
 0x536   :  { %1474 = vpow2.f32 %v1148_v50 }
 0x53f   :  { %v1473_v51 = vpop.eup %1472 }
 0x540   :  { %v745_v52 = vadd.f32 1.0, %v1473_v51  ;;  %v1475_v53 = vpop.eup %1474 }
 0x541   :  { %v752_v54 = vadd.f32 1.0, %v1475_v53  ;;  %v1512_v53 = vld [vmem:[#allocation6] ss:$12 sps:$4 sm:$0xff]  }
 0x542   :  { %1476 = vrcp.f32 %v745_v52 }
 0x543   :  { %1478 = vrcp.f32 %v752_v54  ;;  %v1513_v54 = vld [vmem:[#allocation6 + $0x1c] ss:$12 sps:$4 sm:$0xff]  }
 0x54c   :  { %v1477_v56 = vpop.eup %1476 }
 0x54d   :  { %v756_v58 = vmul.f32 %v1477_v56, %v755_v55  ;;  %v1479_v60 = vpop.eup %1478  ;;  %v1514_v55 = vld [vmem:[#allocation6 + $0x18] ss:$12 sps:$4 sm:$0xff]   ;;  %v1515_v56 = vld [vmem:[#allocation6 + $0x34] ss:$12 sps:$4 sm:$0xff]  }
 0x54e   :  { %v759_v61 = vsub.f32 1.0, %v1479_v60  ;;  %v761_v25 = vmul.f32 %v1479_v60, %v1899_v34  ;;  %v878_v60 = vld [vmem:[#allocation3 + $0xa0] sm:$0xff] }
 0x54f   :  { %v757_v59 = vadd.f32 %v756_v58, %v658_v57  ;;  %v1516_v57 = vld [vmem:[#allocation6 + $0x30] ss:$12 sps:$4 sm:$0xff]  }
 0x551   :  { %1480 = vtanh.f32 %v757_v59 }
 0x55b   :  { %v1481_v62 = vpop.eup %1480 }
 0x55c   :  { %v760_v63 = vmul.f32 %v1481_v62, %v759_v61 }
 0x55e   :  { %v1941_v27 = vadd.f32 %v761_v25, %v760_v63 }
 0x560   :  { %764 = vst [vmem:[#allocation8 + $0x20] sm:$0xff] %v1941_v27  ;;  %v769_v28 = vpack.c.bf16 %v1941_v27, %v1941_v27 }
 0x562   :  { %803 = vmatmul.mubr.bf16.vlgmr.msra.gmra.mrb[20].mxu0 %v769_v28  ;;  %1344 = vmatmul.mubr.bf16.vlgmr.msra.gmra.mrb[20].mxu1 %v769_v28 }
 0x563   :  { %881 = vmatpush1.bf16.msra.mxu0 %v1653_v3  ;;  %1348 = vmatpush3.bf16.msra.mxu1 %v1670_v9  ;;  %v766_v3 = vld [vmem:[#allocation3 + $0x78] sm:$0xff] }
 0x564   :  { %882 = vmatprep.subr.bf16.mxu0 %v1656_v4  ;;  %1349 = vmatprep.subr.bf16.mxu1 %v1596_v0 }
 0x565   :  { %912 = vmatprep.mubr.bf16.mxu0 %v1597_v1  ;;  %1363 = vmatprep.mubr.msk.bf16.mxu1 %vm1598_vm0, %v1596_v0 }
 0x567   :  { %883 = vmatpush1.bf16.msra.mxu0 %v1659_v5  ;;  %1350 = vmatpush3.bf16.msra.mxu1 %v1680_v12 }
 0x568   :  { %884 = vmatprep.subr.bf16.mxu0 %v1662_v6  ;;  %1351 = vmatprep.subr.bf16.mxu1 %v1596_v0 }
 0x56b   :  { %885 = vmatpush1.bf16.msra.mxu0 %v1665_v7  ;;  %1352 = vmatpush3.bf16.msra.mxu1 %v1686_v14  ;;  %v767_v7 = vld [vmem:[#allocation3 + $0x80] sm:$0xff] }
 0x56c   :  { %886 = vmatprep.subr.bf16.mxu0 %v1668_v8  ;;  %1353 = vmatprep.subr.bf16.mxu1 %v1596_v0 }
 0x56f   :  { %887 = vmatpush1.bf16.msra.mxu0 %v1673_v10  ;;  %1354 = vmatpush3.bf16.msra.mxu1 %v1696_v17 }
 0x570   :  { %888 = vmatprep.subr.bf16.mxu0 %v1677_v11  ;;  %1355 = vmatprep.subr.bf16.mxu1 %v1596_v0 }
 0x573   :  { %889 = vmatpush1.bf16.msra.mxu0 %v1682_v13  ;;  %1356 = vmatpush3.bf16.msra.mxu1 %v1706_v20 }
 0x574   :  { %890 = vmatprep.subr.bf16.mxu0 %v1689_v15  ;;  %1357 = vmatprep.subr.bf16.mxu1 %v1596_v0 }
 0x577   :  { %891 = vmatpush1.bf16.msra.mxu0 %v1693_v16  ;;  %1358 = vmatpush3.bf16.msra.mxu1 %v1716_v23 }
 0x578   :  { %892 = vmatprep.subr.bf16.mxu0 %v1699_v18  ;;  %1359 = vmatprep.subr.bf16.mxu1 %v1596_v0 }
 0x57b   :  { %893 = vmatpush1.bf16.msra.mxu0 %v1703_v19  ;;  %1360 = vmatpush3.bf16.msra.mxu1 %v1722_v24 }
 0x57c   :  { %894 = vmatprep.subr.bf16.mxu0 %v1709_v21  ;;  %1361 = vmatprep.subr.bf16.mxu1 %v1596_v0 }
 0x57f   :  { %895 = vmatpush1.bf16.msra.mxu0 %v1713_v22  ;;  %1362 = vmatpush3.bf16.msra.mxu1 %v1727_v26 }
 0x580   :  { %990 = vmatprep.subr.bf16.mxu0 %v1651_v2  ;;  %1367 = vmatprep.subr.bf16.mxu1 %v1596_v0 }
 0x635   :  { %v804_v4 = vpop.f32.mrb[20].mxu0  ;;  %v845_v5 = vpop.f32.mrb[20].mxu1 }
 0x636   :  { %v851_v6 = vadd.f32 %v804_v4, %v766_v3  ;;  %v806_v8 = vpop.f32.mrb[21].mxu0  ;;  %v1345_v29 = vpop.f32.mrb[21].mxu1  ;;  %v865_v40 = vadd.f32 %v1770_v44, %v845_v5 }
 0x637   :  { %v808_v30 = vpop.f32.mrb[22].mxu0  ;;  %v848_v31 = vpop.f32.mrb[22].mxu1  ;;  %v858_v35 = vadd.f32 %v806_v8, %v767_v7 }
 0x638   :  { %v1149_v32 = vmul.f32 -1.442695, %v851_v6  ;;  %v809_v33 = vpop.f32.mrb[23].mxu0  ;;  %v1346_v34 = vpop.f32.mrb[23].mxu1  ;;  %v986_v6 = vld [vmem:[#allocation3 + $0xa8] sm:$0xff]  ;;  %v987_v30 = vld [vmem:[#allocation3 + $0xb0] sm:$0xff] }
 0x639   :  { %v1150_v36 = vmul.f32 -1.442695, %v858_v35 }
 0x63a   :  { %1482 = vpow2.f32 %v1149_v32 }
 0x63b   :  { %1484 = vpow2.f32 %v1150_v36 }
 0x644   :  { %v1483_v37 = vpop.eup %1482 }
 0x645   :  { %v855_v2 = vadd.f32 1.0, %v1483_v37  ;;  %v1485_v38 = vpop.eup %1484 }
 0x646   :  { %v862_v39 = vadd.f32 1.0, %v1485_v38 }
 0x647   :  { %1486 = vrcp.f32 %v855_v2 }
 0x648   :  { %1488 = vrcp.f32 %v862_v39 }
 0x651   :  { %v1487_v41 = vpop.eup %1486 }
 0x652   :  { %v866_v43 = vmul.f32 %v1487_v41, %v865_v40  ;;  %v1489_v46 = vpop.eup %1488 }
 0x653   :  { %v869_v47 = vsub.f32 1.0, %v1489_v46  ;;  %v871_v50 = vmul.f32 %v1489_v46, %v1941_v27  ;;  %v988_v46 = vld [vmem:[#allocation3 + $0xb8] sm:$0xff] }
 0x654   :  { %v867_v45 = vadd.f32 %v866_v43, %v768_v42 }
 0x656   :  { %1490 = vtanh.f32 %v867_v45 }
 0x660   :  { %v1491_v48 = vpop.eup %1490 }
 0x661   :  { %v870_v49 = vmul.f32 %v1491_v48, %v869_v47 }
 0x663   :  { %v1983_v51 = vadd.f32 %v871_v50, %v870_v49 }
 0x665   :  { %874 = vst [vmem:[#allocation8 + $0x28] sm:$0xff] %v1983_v51  ;;  %v879_v52 = vpack.c.bf16 %v1983_v51, %v1983_v51 }
 0x667   :  { %913 = vmatmul.mubr.bf16.vlgmr.msra.gmra.mrb[24].mxu0 %v879_v52  ;;  %1364 = vmatmul.mubr.bf16.vlgmr.msra.gmra.mrb[24].mxu1 %v879_v52 }
 0x668   :  { %991 = vmatpush1.bf16.msra.mxu0 %v1512_v53  ;;  %1368 = vmatpush3.bf16.msra.mxu1 %v1670_v9  ;;  %v1517_v9 = vld [vmem:[#allocation6 + $0x4c] ss:$12 sps:$4 sm:$0xff]  }
 0x669   :  { %992 = vmatprep.subr.bf16.mxu0 %v1513_v54  ;;  %1369 = vmatprep.subr.bf16.mxu1 %v1596_v0 }
 0x66a   :  { %1022 = vmatprep.mubr.bf16.mxu0 %v1597_v1  ;;  %1383 = vmatprep.mubr.msk.bf16.mxu1 %vm1598_vm0, %v1596_v0  ;;  %v876_v1 = vld [vmem:[#allocation3 + $0x90] sm:$0xff] }
 0x66c   :  { %993 = vmatpush1.bf16.msra.mxu0 %v1514_v55  ;;  %1370 = vmatpush3.bf16.msra.mxu1 %v1680_v12 }
 0x66d   :  { %994 = vmatprep.subr.bf16.mxu0 %v1515_v56  ;;  %1371 = vmatprep.subr.bf16.mxu1 %v1596_v0 }
 0x670   :  { %995 = vmatpush1.bf16.msra.mxu0 %v1516_v57  ;;  %1372 = vmatpush3.bf16.msra.mxu1 %v1686_v14 }
 0x671   :  { %996 = vmatprep.subr.bf16.mxu0 %v1517_v9  ;;  %1373 = vmatprep.subr.bf16.mxu1 %v1596_v0 }
 0x674   :  { %997 = vmatpush1.bf16.msra.mxu0 %v1673_v10  ;;  %1374 = vmatpush3.bf16.msra.mxu1 %v1696_v17 }
 0x675   :  { %998 = vmatprep.subr.bf16.mxu0 %v1677_v11  ;;  %1375 = vmatprep.subr.bf16.mxu1 %v1596_v0 }
 0x678   :  { %999 = vmatpush1.bf16.msra.mxu0 %v1682_v13  ;;  %1376 = vmatpush3.bf16.msra.mxu1 %v1706_v20  ;;  %v877_v13 = vld [vmem:[#allocation3 + $0x98] sm:$0xff] }
 0x679   :  { %1000 = vmatprep.subr.bf16.mxu0 %v1689_v15  ;;  %1377 = vmatprep.subr.bf16.mxu1 %v1596_v0 }
 0x67c   :  { %1001 = vmatpush1.bf16.msra.mxu0 %v1693_v16  ;;  %1378 = vmatpush3.bf16.msra.mxu1 %v1716_v23 }
 0x67d   :  { %1002 = vmatprep.subr.bf16.mxu0 %v1699_v18  ;;  %1379 = vmatprep.subr.bf16.mxu1 %v1596_v0 }
 0x680   :  { %1003 = vmatpush1.bf16.msra.mxu0 %v1703_v19  ;;  %1380 = vmatpush3.bf16.msra.mxu1 %v1722_v24 }
 0x681   :  { %1004 = vmatprep.subr.bf16.mxu0 %v1709_v21  ;;  %1381 = vmatprep.subr.bf16.mxu1 %v1596_v0 }
 0x684   :  { %1005 = vmatpush1.bf16.msra.mxu0 %v1713_v22  ;;  %1382 = vmatpush3.bf16.msra.mxu1 %v1727_v26 }
 0x73a   :  { %v914_v10 = vpop.f32.mrb[24].mxu0  ;;  %v955_v11 = vpop.f32.mrb[24].mxu1 }
 0x73b   :  { %v961_v12 = vadd.f32 %v914_v10, %v876_v1  ;;  %v916_v14 = vpop.f32.mrb[25].mxu0  ;;  %v1365_v15 = vpop.f32.mrb[25].mxu1  ;;  %v975_v58 = vadd.f32 %v1770_v44, %v955_v11 }
 0x73c   :  { %v918_v16 = vpop.f32.mrb[26].mxu0  ;;  %v958_v17 = vpop.f32.mrb[26].mxu1  ;;  %v968_v23 = vadd.f32 %v916_v14, %v877_v13 }
 0x73d   :  { %v1151_v18 = vmul.f32 -1.442695, %v961_v12  ;;  %v919_v19 = vpop.f32.mrb[27].mxu0  ;;  %v1366_v20 = vpop.f32.mrb[27].mxu1 }
 0x73e   :  { %v1152_v21 = vmul.f32 -1.442695, %v968_v23 }
 0x73f   :  { %1492 = vpow2.f32 %v1151_v18 }
 0x740   :  { %1494 = vpow2.f32 %v1152_v21 }
 0x749   :  { %v1493_v0 = vpop.eup %1492 }
 0x74a   :  { %v965_v22 = vadd.f32 1.0, %v1493_v0  ;;  %v1495_v24 = vpop.eup %1494 }
 0x74b   :  { %v972_v26 = vadd.f32 1.0, %v1495_v24 }
 0x74c   :  { %1496 = vrcp.f32 %v965_v22 }
 0x74d   :  { %1498 = vrcp.f32 %v972_v26 }
 0x756   :  { %v1497_v59 = vpop.eup %1496 }
 0x757   :  { %v976_v61 = vmul.f32 %v1497_v59, %v975_v58  ;;  %v1499_v63 = vpop.eup %1498 }
 0x758   :  { %v979_v25 = vsub.f32 1.0, %v1499_v63  ;;  %v981_v3 = vmul.f32 %v1499_v63, %v1983_v51 }
 0x759   :  { %v977_v62 = vadd.f32 %v976_v61, %v878_v60 }
 0x75b   :  { %1500 = vtanh.f32 %v977_v62 }
 0x765   :  { %v1501_v27 = vpop.eup %1500 }
 0x766   :  { %v980_v28 = vmul.f32 %v1501_v27, %v979_v25 }
 0x768   :  { %v982_v4 = vadd.f32 %v981_v3, %v980_v28 }
 0x76a   :  { %984 = vst [vmem:[#allocation8 + $0x30] sm:$0xff] %v982_v4  ;;  %v989_v5 = vpack.c.bf16 %v982_v4, %v982_v4 }
 0x76c   :  { %1023 = vmatmul.mubr.bf16.vlgmr.msra.gmra.mrb[28].mxu0 %v989_v5  ;;  %1384 = vmatmul.mubr.bf16.vlgmr.msra.gmra.mrb[28].mxu1 %v989_v5 }
 0x83f   :  { %v1024_v7 = vpop.f32.mrb[28].mxu0  ;;  %v1065_v8 = vpop.f32.mrb[28].mxu1 }
 0x840   :  { %v1071_v29 = vadd.f32 %v1024_v7, %v986_v6  ;;  %v1026_v31 = vpop.f32.mrb[29].mxu0  ;;  %v1385_v32 = vpop.f32.mrb[29].mxu1  ;;  %v1085_v43 = vadd.f32 %v1770_v44, %v1065_v8 }
 0x841   :  { %v1028_v33 = vpop.f32.mrb[30].mxu0  ;;  %v1068_v34 = vpop.f32.mrb[30].mxu1  ;;  %v1078_v2 = vadd.f32 %v1026_v31, %v987_v30 }
 0x842   :  { %v1153_v35 = vmul.f32 -1.442695, %v1071_v29  ;;  %v1029_v36 = vpop.f32.mrb[31].mxu0  ;;  %v1386_v37 = vpop.f32.mrb[31].mxu1 }
 0x843   :  { %v1154_v38 = vmul.f32 -1.442695, %v1078_v2 }
 0x844   :  { %1502 = vpow2.f32 %v1153_v35 }
 0x845   :  { %1504 = vpow2.f32 %v1154_v38 }
 0x84e   :  { %v1503_v39 = vpop.eup %1502 }
 0x84f   :  { %v1075_v40 = vadd.f32 1.0, %v1503_v39  ;;  %v1505_v41 = vpop.eup %1504 }
 0x850   :  { %v1082_v42 = vadd.f32 1.0, %v1505_v41 }
 0x851   :  { %1506 = vrcp.f32 %v1075_v40 }
 0x852   :  { %1508 = vrcp.f32 %v1082_v42 }
 0x85b   :  { %v1507_v45 = vpop.eup %1506 }
 0x85c   :  { %v1086_v47 = vmul.f32 %v1507_v45, %v1085_v43  ;;  %v1509_v49 = vpop.eup %1508 }
 0x85d   :  { %v1089_v50 = vsub.f32 1.0, %v1509_v49  ;;  %v1091_v53 = vmul.f32 %v1509_v49, %v982_v4 }
 0x85e   :  { %v1087_v48 = vadd.f32 %v1086_v47, %v988_v46 }
 0x860   :  { %1510 = vtanh.f32 %v1087_v48 }
 0x86a   :  { %v1511_v51 = vpop.eup %1510 }
 0x86b   :  { %v1090_v52 = vmul.f32 %v1511_v51, %v1089_v50 }
 0x86d   :  { %v1092_v54 = vadd.f32 %v1091_v53, %v1090_v52 }
 0x86f   :  { %1094 = vst [vmem:[#allocation8 + $0x38] sm:$0xff] %v1092_v54 }
 0x870   :  { %1573 = shalt.err (!%p1570_p6)
}
 0x871   :  { %s1574_s17 = scalar_lea.hbm %s2033_s3, 1024 }
 0x872   :  { %p1575_p7 = scmp.ne.s32.totalorder %s2033_s3, %s1574_s17  ;;  %p1578_p8 = scmp.lt.u32.totalorder %s1574_s17, %s2033_s3 }
 0x874   :  { %p1580_p9 = pnand %p1578_p8, %p1575_p7 }
 0x876   :  { %1583 = shalt.err (!%p1580_p9)
}
 0x877   :  { %s1601_s22 = smov 128   ;;  %s1602_s23 = smov 8  }
 0x878   :  { %1107 = dma.vmem_to_hbm [thread:$0]  %s1102_s13, 1024, %s2033_s3, [#allocation5], %s1601_s22, %s1601_s22, %s1602_s23  }
 0x879   :  { %1588 = dma.done.wait [#allocation5], 1024  }
 0x87a   :  { %1589 = vsyncadd [#allocation5], 4294966272 }
 0x87b   :  { %1111 = vsyncpa [#allocation4], 1 }
 0x87c   :  { %1112 = vsyncpa [#allocation7], 1 }
 0x87d   :  { %1113 = vsyncpa [#allocation5], 1 }

</bundles_post_ra>
